<compile_context>
chip_gen: v5e
topology: v5e:2x2
jax: 0.10.0
libtpu: 0.0.40
codegen_flags: <defaults>
</compile_context>

<pallas_src>
import functools

import numpy as np
import jax
import jax.numpy as jnp
from jax import lax
from jax.experimental import pallas as pl
from jax.experimental.pallas import tpu as pltpu


# ----------------------------------------------------------------------------
# Kernel bodies
# ----------------------------------------------------------------------------
def _patch_embed_kernel(p_ref, w_ref, b_ref, t_ref, o_ref):
    """o = patches @ W + (conv_bias + channel_pos) + time_pos[row]."""
    y = jnp.dot(p_ref[...], w_ref[...], preferred_element_type=jnp.float32)
    y = y + b_ref[...] + t_ref[...]
    o_ref[...] = y.astype(o_ref.dtype)


def _layernorm(x, g, b, eps):
    mu = jnp.mean(x, axis=-1, keepdims=True)
    xc = x - mu
    var = jnp.mean(xc * xc, axis=-1, keepdims=True)
    return xc * lax.rsqrt(var + eps) * g + b


def _encoder_layer_math(x, w, *, nhead, eps):
    """Post-LN nn.TransformerEncoderLayer (eval mode).  x: [S, H] -> [S, H]."""
    (wqkv, bqkv, wo, bo, g1, be1, w1, b1, w2, b2, g2, be2) = w
    H = x.shape[-1]
    qkv = jnp.dot(x, wqkv, preferred_element_type=jnp.float32) + bqkv
    q, k, v = qkv[:, 0:H], qkv[:, H:2 * H], qkv[:, 2 * H:3 * H]
    hd = H // nhead
    scale = 1.0 / float(np.sqrt(hd))
    heads = []
    for h in range(nhead):                       # static loop (nhead=1 by default)
        qh = q[:, h * hd:(h + 1) * hd] * scale
        kh = k[:, h * hd:(h + 1) * hd]
        vh = v[:, h * hd:(h + 1) * hd]
        s = lax.dot_general(qh, kh, (((1,), (1,)), ((), ())),
                            preferred_element_type=jnp.float32)     # [S, S]
        s = s - jnp.max(s, axis=-1, keepdims=True)
        p = jnp.exp(s)
        p = p / jnp.sum(p, axis=-1, keepdims=True)
        heads.append(jnp.dot(p, vh, preferred_element_type=jnp.float32))
    attn = heads[0] if nhead == 1 else jnp.concatenate(heads, axis=-1)
    attn = jnp.dot(attn, wo, preferred_element_type=jnp.float32) + bo
    x1 = _layernorm(x + attn, g1, be1, eps)
    ff = jnp.maximum(jnp.dot(x1, w1, preferred_element_type=jnp.float32) + b1, 0.0)
    ff = jnp.dot(ff, w2, preferred_element_type=jnp.float32) + b2
    return _layernorm(x1 + ff, g2, be2, eps)


def _encoder_mean_kernel(x_ref, wqkv_ref, bqkv_ref, wo_ref, bo_ref,
                         g1_ref, be1_ref, w1_ref, b1_ref, w2_ref, b2_ref,
                         g2_ref, be2_ref, o_ref, *, nhead, eps):
    """One TransformerEncoderLayer on one sequence + mean over tokens, fused."""
    x = x_ref[0].astype(jnp.float32)             # [T, H]
    w = (wqkv_ref[...], bqkv_ref[...], wo_ref[...], bo_ref[...],
         g1_ref[...], be1_ref[...], w1_ref[...], b1_ref[...],
         w2_ref[...], b2_ref[...], g2_ref[...], be2_ref[...])
    y = _encoder_layer_math(x, w, nhead=nhead, eps=eps)
    o_ref[0] = jnp.mean(y, axis=0, keepdims=True).astype(o_ref.dtype)


def _aggregate_kernel(s_ref, p_ref, wqkv_ref, bqkv_ref, wo_ref, bo_ref,
                      g1_ref, be1_ref, w1_ref, b1_ref, w2_ref, b2_ref,
                      g2_ref, be2_ref, lw_ref, lb_ref, o_ref,
                      *, num_layers, nhead, eps):
    """aggregated = sound_mean + phi_mean; N encoder layers (seq = batch); Linear."""
    x = s_ref[...].astype(jnp.float32) + p_ref[...].astype(jnp.float32)   # [B, H]
    for l in range(num_layers):                  # static loop over stacked layers
        w = (wqkv_ref[l], bqkv_ref[l], wo_ref[l], bo_ref[l],
             g1_ref[l], be1_ref[l], w1_ref[l], b1_ref[l],
             w2_ref[l], b2_ref[l], g2_ref[l], be2_ref[l])
        x = _encoder_layer_math(x, w, nhead=nhead, eps=eps)
    y = jnp.dot(x, lw_ref[...], preferred_element_type=jnp.float32) + lb_ref[...]
    o_ref[...] = y.astype(o_ref.dtype)


# ----------------------------------------------------------------------------
# Wrappers (JAX glue: patch extraction / reshapes only; all math in Pallas)
# ----------------------------------------------------------------------------
def _full_spec(shape):
    n = len(shape)
    return pl.BlockSpec(shape, lambda *_: (0,) * n)


def patch_embed_forward(x, pe):
    """PatchEmbed: x [B, C, D, H, W] (NCDHW) -> tokens [B, T, hidden]."""
    w, b, tpos = pe["w"], pe["b"], pe["time_pos"]       # [K,hid], [1,hid], [max_len]
    B, C, D, H, W = x.shape
    kd, kh, kw = 3, 3, 2                                # kernel == stride (non-overlap)
    Do, Ho, Wo = (D - kd) // kd + 1, (H - kh) // kh + 1, (W - kw) // kw + 1
    assert Wo == 1, "module semantics: last spatial dim must collapse under squeeze()"
    xc = x[:, :, :Do * kd, :Ho * kh, :Wo * kw]
    patches = xc.reshape(B, C, Do, kd, Ho, kh, Wo, kw)
    patches = jnp.transpose(patches, (0, 2, 4, 6, 1, 3, 5, 7))   # [B,Do,Ho,Wo,C,kd,kh,kw]
    T = Do * Ho * Wo
    M, K = B * T, C * kd * kh * kw
    patches = patches.reshape(M, K).astype(jnp.float32)
    hidden = w.shape[1]
    # per-row time positional embedding (token index = row % T)
    tcol = jnp.tile(tpos[:T], B).reshape(M, 1).astype(jnp.float32)

    out = pl.pallas_call(
        _patch_embed_kernel,
        out_shape=jax.ShapeDtypeStruct((M, hidden), jnp.float32),
        grid=(1,),
        in_specs=[_full_spec((M, K)), _full_spec((K, hidden)),
                  _full_spec((1, hidden)), _full_spec((M, 1))],
        out_specs=_full_spec((M, hidden)),
    )(patches, w, b, tcol)
    return out.reshape(B, T, hidden)


def transformer_mean(x, lp, *, nhead, eps=1e-5):
    """TransformerEncoderLayer(x).mean(dim=1): [B, T, H] -> [B, H]. One call, grid over B."""
    B, T, H = x.shape
    F = lp["w1"].shape[1]
    kern = functools.partial(_encoder_mean_kernel, nhead=nhead, eps=eps)
    out = pl.pallas_call(
        kern,
        out_shape=jax.ShapeDtypeStruct((B, 1, H), jnp.float32),
        grid=(B,),
        in_specs=[
            pl.BlockSpec((1, T, H), lambda b: (b, 0, 0)),
            _full_spec((H, 3 * H)), _full_spec((1, 3 * H)),
            _full_spec((H, H)), _full_spec((1, H)),
            _full_spec((1, H)), _full_spec((1, H)),
            _full_spec((H, F)), _full_spec((1, F)),
            _full_spec((F, H)), _full_spec((1, H)),
            _full_spec((1, H)), _full_spec((1, H)),
        ],
        out_specs=pl.BlockSpec((1, 1, H), lambda b: (b, 0, 0)),
        compiler_params=pltpu.CompilerParams(dimension_semantics=("parallel",)),
    )(x.astype(jnp.float32), lp["wqkv"], lp["bqkv"], lp["wo"], lp["bo"],
      lp["g1"], lp["be1"], lp["w1"], lp["b1"], lp["w2"], lp["b2"],
      lp["g2"], lp["be2"])
    return out[:, 0, :]


def aggregate_forward(s_mean, p_mean, agg, lin_w, lin_b, *, nhead, eps=1e-5):
    """(sound_mean + phi_mean) -> aggregate TransformerEncoder -> Linear, one call."""
    B, H = s_mean.shape
    L = agg["wqkv"].shape[0]
    F = agg["w1"].shape[2]
    C = lin_w.shape[1]
    kern = functools.partial(_aggregate_kernel, num_layers=L, nhead=nhead, eps=eps)
    return pl.pallas_call(
        kern,
        out_shape=jax.ShapeDtypeStruct((B, C), jnp.float32),
        grid=(1,),
        in_specs=[
            _full_spec((B, H)), _full_spec((1, H)),
            _full_spec((L, H, 3 * H)), _full_spec((L, 1, 3 * H)),
            _full_spec((L, H, H)), _full_spec((L, 1, H)),
            _full_spec((L, 1, H)), _full_spec((L, 1, H)),
            _full_spec((L, H, F)), _full_spec((L, 1, F)),
            _full_spec((L, F, H)), _full_spec((L, 1, H)),
            _full_spec((L, 1, H)), _full_spec((L, 1, H)),
            _full_spec((H, C)), _full_spec((1, C)),
        ],
        out_specs=_full_spec((B, C)),
    )(s_mean, p_mean,
      agg["wqkv"], agg["bqkv"], agg["wo"], agg["bo"],
      agg["g1"], agg["be1"], agg["w1"], agg["b1"], agg["w2"], agg["b2"],
      agg["g2"], agg["be2"], lin_w, lin_b)


def aggregate_transformer_forward(sound, phi, params, *, nhead=1):
    """sound: [B, 8, D, H, W];  phi: [1, 4, D, H, W] (or [4, D, H, W])."""
    if phi.ndim == 4:
        phi = phi[None]
    s_tok = patch_embed_forward(sound, params["sound_proj"])          # [B, Ts, H]
    s_mean = transformer_mean(s_tok, params["sound_layer"], nhead=nhead)  # [B, H]
    p_tok = patch_embed_forward(phi, params["mod_proj"])              # [1, Tp, H]
    p_mean = transformer_mean(p_tok, params["mod_layer"], nhead=nhead)    # [1, H]
    # phi.expand(B, -1) + sound, aggregate TransformerEncoder (seq = batch), Linear.
    return aggregate_forward(s_mean, p_mean, params["agg_layers"],
                             params["lin_w"], params["lin_b"], nhead=nhead)


# ----------------------------------------------------------------------------
# Parameter init -- directly in kernel-ready layout (weight prep hoisted to init)
# ----------------------------------------------------------------------------
def _uniform(key, shape, bound):
    return jax.random.uniform(key, shape, jnp.float32, -bound, bound)


def init_patch_embed(key, num_channels, hidden, max_length):
    K = num_channels * 3 * 3 * 2                         # Conv3d(3,3,2) im2col K
    k1, k2, k3, k4 = jax.random.split(key, 4)
    bound = 1.0 / np.sqrt(K)
    w = _uniform(k1, (K, hidden), bound)                 # already [K, hidden]
    conv_b = _uniform(k2, (hidden,), bound)
    ch_pos = jax.random.normal(k3, (hidden,), jnp.float32)
    time_pos = jax.random.normal(k4, (max_length,), jnp.float32)
    return {"w": w,
            "b": (conv_b + ch_pos).reshape(1, hidden),   # conv bias + channel pos fused
            "time_pos": time_pos}


def init_encoder_layer(key, hidden, ffn):
    ks = jax.random.split(key, 8)
    ba = 1.0 / np.sqrt(hidden)
    bf = 1.0 / np.sqrt(ffn)
    return {
        "wqkv": _uniform(ks[0], (hidden, 3 * hidden), ba),
        "bqkv": _uniform(ks[1], (1, 3 * hidden), ba),
        "wo": _uniform(ks[2], (hidden, hidden), ba),
        "bo": _uniform(ks[3], (1, hidden), ba),
        "g1": jnp.ones((1, hidden), jnp.float32),
        "be1": jnp.zeros((1, hidden), jnp.float32),
        "w1": _uniform(ks[4], (hidden, ffn), ba),
        "b1": _uniform(ks[5], (1, ffn), ba),
        "w2": _uniform(ks[6], (ffn, hidden), bf),
        "b2": _uniform(ks[7], (1, hidden), bf),
        "g2": jnp.ones((1, hidden), jnp.float32),
        "be2": jnp.zeros((1, hidden), jnp.float32),
    }


def _stack_layers(layers):
    return {k: jnp.stack([l[k] for l in layers], axis=0) for k in layers[0]}


def init_aggregate_transformer(key, hidden, num_layers, num_coords, max_length):
    ks = jax.random.split(key, 6 + num_layers)
    bound = 1.0 / np.sqrt(hidden)
    return {
        "sound_proj": init_patch_embed(ks[0], 8, hidden, max_length),
        "mod_proj": init_patch_embed(ks[1], 4, hidden, max_length),
        "sound_layer": init_encoder_layer(ks[2], hidden, hidden),
        "mod_layer": init_encoder_layer(ks[3], hidden, hidden),
        "agg_layers": _stack_layers(
            [init_encoder_layer(ks[6 + l], hidden, hidden) for l in range(num_layers)]),
        "lin_w": _uniform(ks[4], (hidden, num_coords), bound),
        "lin_b": _uniform(ks[5], (1, num_coords), bound),
    }


# ----------------------------------------------------------------------------
if __name__ == "__main__":
    HIDDEN = 32        # d_model = dim_feedforward
    NHEAD = 1
    NUM_LAYERS = 1     # aggregate TransformerEncoder depth
    NUM_COORDS = 1
    MAX_LEN = 64
    B, D, H, W = 2, 9, 9, 2   # Conv3d(3,3,2)/stride(3,3,2) -> 3x3x1 -> 9 tokens

    key = jax.random.PRNGKey(0)
    kp, ks, kq = jax.random.split(key, 3)
    params = init_aggregate_transformer(kp, HIDDEN, NUM_LAYERS, NUM_COORDS, MAX_LEN)

    sound = jax.random.normal(ks, (B, 8, D, H, W), jnp.float32)   # NCDHW like PyTorch
    phi = jax.random.normal(kq, (1, 4, D, H, W), jnp.float32)     # batch-1 modulation

    fwd = jax.jit(functools.partial(aggregate_transformer_forward, nhead=NHEAD))
    out = fwd(sound, phi, params)
    out = jax.block_until_ready(out)
    assert out.shape == (B, NUM_COORDS), out.shape
    assert bool(jnp.all(jnp.isfinite(out)))
    print("KERNEL_OK")
</pallas_src>

<mosaic_0001>
module attributes {stable_mosaic.version = 11 : i64} {
  func.func @_patch_embed_kernel(%arg0: i32, %arg1: memref<18x144xf32, #tpu.memory_space<vmem>>, %arg2: memref<144x32xf32, #tpu.memory_space<vmem>>, %arg3: memref<1x32xf32, #tpu.memory_space<vmem>>, %arg4: memref<18x1xf32, #tpu.memory_space<vmem>>, %arg5: memref<18x32xf32, #tpu.memory_space<vmem>>) attributes {dimension_semantics = [#tpu.dimension_semantics<arbitrary>], iteration_bounds = array<i64: 1>, scalar_prefetch = 0 : i64, scratch_operands = 0 : i64, tpu.core_type = #tpu.core_type<tc>, window_params = [{pipeline_mode = #tpu.pipeline_mode<synchronous>, transform_indices = @transform_0, window_bounds = array<i64: 18, 144>}, {pipeline_mode = #tpu.pipeline_mode<synchronous>, transform_indices = @transform_1, window_bounds = array<i64: 144, 32>}, {pipeline_mode = #tpu.pipeline_mode<synchronous>, transform_indices = @transform_2, window_bounds = array<i64: 1, 32>}, {pipeline_mode = #tpu.pipeline_mode<synchronous>, transform_indices = @transform_3, window_bounds = array<i64: 18, 1>}, {pipeline_mode = #tpu.pipeline_mode<synchronous>, transform_indices = @transform_4, window_bounds = array<i64: 18, 32>}]} {
    %c0 = arith.constant 0 : index
    %c0_0 = arith.constant 0 : index
    %0 = vector.load %arg1[%c0, %c0_0] : memref<18x144xf32, #tpu.memory_space<vmem>>, vector<18x144xf32>
    %c0_1 = arith.constant 0 : index
    %c0_2 = arith.constant 0 : index
    %1 = vector.load %arg2[%c0_1, %c0_2] : memref<144x32xf32, #tpu.memory_space<vmem>>, vector<144x32xf32>
    %cst = arith.constant dense<0.000000e+00> : vector<18x32xf32>
    %2 = tpu.matmul %0, %1, %cst {dimension_numbers = #tpu.dot_dimension_numbers<[1], [0], [0], [1], [0, 0, 1, 1], [], []>} : vector<18x144xf32>, vector<144x32xf32>, vector<18x32xf32> -> vector<18x32xf32>
    %c0_3 = arith.constant 0 : index
    %c0_4 = arith.constant 0 : index
    %3 = vector.load %arg3[%c0_3, %c0_4] : memref<1x32xf32, #tpu.memory_space<vmem>>, vector<1x32xf32>
    %4 = vector.broadcast %3 : vector<1x32xf32> to vector<18x32xf32>
    %5 = arith.addf %2, %4 : vector<18x32xf32>
    %c0_5 = arith.constant 0 : index
    %c0_6 = arith.constant 0 : index
    %6 = vector.load %arg4[%c0_5, %c0_6] : memref<18x1xf32, #tpu.memory_space<vmem>>, vector<18x1xf32>
    %7 = vector.broadcast %6 : vector<18x1xf32> to vector<18x32xf32>
    %8 = arith.addf %5, %7 : vector<18x32xf32>
    %c0_7 = arith.constant 0 : index
    %c0_8 = arith.constant 0 : index
    %9 = vector.load %arg5[%c0_7, %c0_8] : memref<18x32xf32, #tpu.memory_space<vmem>>, vector<18x32xf32>
    tpu.vector_store %arg5[%c0_7, %c0_8], %8 {strides = array<i32>} : memref<18x32xf32, #tpu.memory_space<vmem>>, vector<18x32xf32>,
    return
  }
  func.func @transform_0(%arg0: i32) -> (i32, i32) {
    %c0_i32 = arith.constant 0 : i32
    %c0_i32_0 = arith.constant 0 : i32
    %c0_i32_1 = arith.constant 0 : i32
    return %c0_i32, %c0_i32_0 : i32, i32
  }
  func.func @transform_1(%arg0: i32) -> (i32, i32) {
    %c0_i32 = arith.constant 0 : i32
    %c0_i32_0 = arith.constant 0 : i32
    %c0_i32_1 = arith.constant 0 : i32
    return %c0_i32, %c0_i32_0 : i32, i32
  }
  func.func @transform_2(%arg0: i32) -> (i32, i32) {
    %c0_i32 = arith.constant 0 : i32
    %c0_i32_0 = arith.constant 0 : i32
    %c0_i32_1 = arith.constant 0 : i32
    return %c0_i32, %c0_i32_0 : i32, i32
  }
  func.func @transform_3(%arg0: i32) -> (i32, i32) {
    %c0_i32 = arith.constant 0 : i32
    %c0_i32_0 = arith.constant 0 : i32
    %c0_i32_1 = arith.constant 0 : i32
    return %c0_i32, %c0_i32_0 : i32, i32
  }
  func.func @transform_4(%arg0: i32) -> (i32, i32) {
    %c0_i32 = arith.constant 0 : i32
    %c0_i32_0 = arith.constant 0 : i32
    %c0_i32_1 = arith.constant 0 : i32
    return %c0_i32, %c0_i32_0 : i32, i32
  }
}

module attributes {stable_mosaic.version = 11 : i64} {
  func.func @_encoder_mean_kernel(%arg0: i32, %arg1: memref<1x9x32xf32, #tpu.memory_space<vmem>>, %arg2: memref<32x96xf32, #tpu.memory_space<vmem>>, %arg3: memref<1x96xf32, #tpu.memory_space<vmem>>, %arg4: memref<32x32xf32, #tpu.memory_space<vmem>>, %arg5: memref<1x32xf32, #tpu.memory_space<vmem>>, %arg6: memref<1x32xf32, #tpu.memory_space<vmem>>, %arg7: memref<1x32xf32, #tpu.memory_space<vmem>>, %arg8: memref<32x32xf32, #tpu.memory_space<vmem>>, %arg9: memref<1x32xf32, #tpu.memory_space<vmem>>, %arg10: memref<32x32xf32, #tpu.memory_space<vmem>>, %arg11: memref<1x32xf32, #tpu.memory_space<vmem>>, %arg12: memref<1x32xf32, #tpu.memory_space<vmem>>, %arg13: memref<1x32xf32, #tpu.memory_space<vmem>>, %arg14: memref<1x1x32xf32, #tpu.memory_space<vmem>>) attributes {dimension_semantics = [#tpu.dimension_semantics<parallel>], iteration_bounds = array<i64: 2>, scalar_prefetch = 0 : i64, scratch_operands = 0 : i64, tpu.core_type = #tpu.core_type<tc>, window_params = [{transform_indices = @transform_0, window_bounds = array<i64: 1, 9, 32>}, {pipeline_mode = #tpu.pipeline_mode<synchronous>, transform_indices = @transform_1, window_bounds = array<i64: 32, 96>}, {pipeline_mode = #tpu.pipeline_mode<synchronous>, transform_indices = @transform_2, window_bounds = array<i64: 1, 96>}, {pipeline_mode = #tpu.pipeline_mode<synchronous>, transform_indices = @transform_3, window_bounds = array<i64: 32, 32>}, {pipeline_mode = #tpu.pipeline_mode<synchronous>, transform_indices = @transform_4, window_bounds = array<i64: 1, 32>}, {pipeline_mode = #tpu.pipeline_mode<synchronous>, transform_indices = @transform_5, window_bounds = array<i64: 1, 32>}, {pipeline_mode = #tpu.pipeline_mode<synchronous>, transform_indices = @transform_6, window_bounds = array<i64: 1, 32>}, {pipeline_mode = #tpu.pipeline_mode<synchronous>, transform_indices = @transform_7, window_bounds = array<i64: 32, 32>}, {pipeline_mode = #tpu.pipeline_mode<synchronous>, transform_indices = @transform_8, window_bounds = array<i64: 1, 32>}, {pipeline_mode = #tpu.pipeline_mode<synchronous>, transform_indices = @transform_9, window_bounds = array<i64: 32, 32>}, {pipeline_mode = #tpu.pipeline_mode<synchronous>, transform_indices = @transform_10, window_bounds = array<i64: 1, 32>}, {pipeline_mode = #tpu.pipeline_mode<synchronous>, transform_indices = @transform_11, window_bounds = array<i64: 1, 32>}, {pipeline_mode = #tpu.pipeline_mode<synchronous>, transform_indices = @transform_12, window_bounds = array<i64: 1, 32>}, {transform_indices = @transform_13, window_bounds = array<i64: 1, 1, 32>}]} {
    %c0 = arith.constant 0 : index
    %c0_0 = arith.constant 0 : index
    %c0_1 = arith.constant 0 : index
    %0 = vector.load %arg1[%c0, %c0_0, %c0_1] : memref<1x9x32xf32, #tpu.memory_space<vmem>>, vector<1x9x32xf32>
    %1 = vector.shape_cast %0 : vector<1x9x32xf32> to vector<9x32xf32>
    %c0_2 = arith.constant 0 : index
    %c0_3 = arith.constant 0 : index
    %2 = vector.load %arg2[%c0_2, %c0_3] : memref<32x96xf32, #tpu.memory_space<vmem>>, vector<32x96xf32>
    %c0_4 = arith.constant 0 : index
    %c0_5 = arith.constant 0 : index
    %3 = vector.load %arg3[%c0_4, %c0_5] : memref<1x96xf32, #tpu.memory_space<vmem>>, vector<1x96xf32>
    %c0_6 = arith.constant 0 : index
    %c0_7 = arith.constant 0 : index
    %4 = vector.load %arg4[%c0_6, %c0_7] : memref<32x32xf32, #tpu.memory_space<vmem>>, vector<32x32xf32>
    %c0_8 = arith.constant 0 : index
    %c0_9 = arith.constant 0 : index
    %5 = vector.load %arg5[%c0_8, %c0_9] : memref<1x32xf32, #tpu.memory_space<vmem>>, vector<1x32xf32>
    %c0_10 = arith.constant 0 : index
    %c0_11 = arith.constant 0 : index
    %6 = vector.load %arg6[%c0_10, %c0_11] : memref<1x32xf32, #tpu.memory_space<vmem>>, vector<1x32xf32>
    %c0_12 = arith.constant 0 : index
    %c0_13 = arith.constant 0 : index
    %7 = vector.load %arg7[%c0_12, %c0_13] : memref<1x32xf32, #tpu.memory_space<vmem>>, vector<1x32xf32>
    %c0_14 = arith.constant 0 : index
    %c0_15 = arith.constant 0 : index
    %8 = vector.load %arg8[%c0_14, %c0_15] : memref<32x32xf32, #tpu.memory_space<vmem>>, vector<32x32xf32>
    %c0_16 = arith.constant 0 : index
    %c0_17 = arith.constant 0 : index
    %9 = vector.load %arg9[%c0_16, %c0_17] : memref<1x32xf32, #tpu.memory_space<vmem>>, vector<1x32xf32>
    %c0_18 = arith.constant 0 : index
    %c0_19 = arith.constant 0 : index
    %10 = vector.load %arg10[%c0_18, %c0_19] : memref<32x32xf32, #tpu.memory_space<vmem>>, vector<32x32xf32>
    %c0_20 = arith.constant 0 : index
    %c0_21 = arith.constant 0 : index
    %11 = vector.load %arg11[%c0_20, %c0_21] : memref<1x32xf32, #tpu.memory_space<vmem>>, vector<1x32xf32>
    %c0_22 = arith.constant 0 : index
    %c0_23 = arith.constant 0 : index
    %12 = vector.load %arg12[%c0_22, %c0_23] : memref<1x32xf32, #tpu.memory_space<vmem>>, vector<1x32xf32>
    %c0_24 = arith.constant 0 : index
    %c0_25 = arith.constant 0 : index
    %13 = vector.load %arg13[%c0_24, %c0_25] : memref<1x32xf32, #tpu.memory_space<vmem>>, vector<1x32xf32>
    %cst = arith.constant dense<0.000000e+00> : vector<9x96xf32>
    %14 = tpu.matmul %1, %2, %cst {dimension_numbers = #tpu.dot_dimension_numbers<[1], [0], [0], [1], [0, 0, 1, 1], [], []>} : vector<9x32xf32>, vector<32x96xf32>, vector<9x96xf32> -> vector<9x96xf32>
    %15 = vector.broadcast %3 : vector<1x96xf32> to vector<9x96xf32>
    %16 = arith.addf %14, %15 : vector<9x96xf32>
    %17 = vector.extract_strided_slice %16 {offsets = [0, 0], sizes = [9, 32], strides = [1, 1]} : vector<9x96xf32> to vector<9x32xf32>
    %18 = vector.extract_strided_slice %16 {offsets = [0, 32], sizes = [9, 32], strides = [1, 1]} : vector<9x96xf32> to vector<9x32xf32>
    %19 = vector.extract_strided_slice %16 {offsets = [0, 64], sizes = [9, 32], strides = [1, 1]} : vector<9x96xf32> to vector<9x32xf32>
    %cst_26 = arith.constant 0.176776692 : f32
    %20 = vector.broadcast %cst_26 : f32 to vector<9x32xf32>
    %21 = arith.mulf %17, %20 : vector<9x32xf32>
    %cst_27 = arith.constant dense<0.000000e+00> : vector<9x9xf32>
    %22 = tpu.matmul %21, %18, %cst_27 {dimension_numbers = #tpu.dot_dimension_numbers<[1], [1], [0], [0], [0, 0, 1, 0], [], []>} : vector<9x32xf32>, vector<9x32xf32>, vector<9x9xf32> -> vector<9x9xf32>
    %cst_28 = arith.constant dense<0xFF800000> : vector<9xf32>
    %23 = vector.multi_reduction <maximumf>, %22, %cst_28 [1] : vector<9x9xf32> to vector<9xf32>
    %24 = vector.shape_cast %23 : vector<9xf32> to vector<9x1xf32>
    %25 = vector.broadcast %24 : vector<9x1xf32> to vector<9x9xf32>
    %26 = arith.subf %22, %25 : vector<9x9xf32>
    %27 = math.exp %26 : vector<9x9xf32>
    %cst_29 = arith.constant dense<0.000000e+00> : vector<9xf32>
    %28 = vector.multi_reduction <add>, %27, %cst_29 [1] : vector<9x9xf32> to vector<9xf32>
    %29 = vector.shape_cast %28 : vector<9xf32> to vector<9x1xf32>
    %30 = vector.broadcast %29 : vector<9x1xf32> to vector<9x9xf32>
    %31 = arith.divf %27, %30 : vector<9x9xf32>
    %cst_30 = arith.constant dense<0.000000e+00> : vector<9x32xf32>
    %32 = tpu.matmul %31, %19, %cst_30 {dimension_numbers = #tpu.dot_dimension_numbers<[1], [0], [0], [1], [0, 0, 1, 1], [], []>} : vector<9x9xf32>, vector<9x32xf32>, vector<9x32xf32> -> vector<9x32xf32>
    %cst_31 = arith.constant dense<0.000000e+00> : vector<9x32xf32>
    %33 = tpu.matmul %32, %4, %cst_31 {dimension_numbers = #tpu.dot_dimension_numbers<[1], [0], [0], [1], [0, 0, 1, 1], [], []>} : vector<9x32xf32>, vector<32x32xf32>, vector<9x32xf32> -> vector<9x32xf32>
    %34 = vector.broadcast %5 : vector<1x32xf32> to vector<9x32xf32>
    %35 = arith.addf %33, %34 : vector<9x32xf32>
    %36 = arith.addf %1, %35 : vector<9x32xf32>
    %cst_32 = arith.constant dense<0.000000e+00> : vector<9xf32>
    %37 = vector.multi_reduction <add>, %36, %cst_32 [1] : vector<9x32xf32> to vector<9xf32>
    %38 = vector.shape_cast %37 : vector<9xf32> to vector<9x1xf32>
    %cst_33 = arith.constant 3.200000e+01 : f32
    %39 = vector.broadcast %cst_33 : f32 to vector<9x1xf32>
    %40 = arith.divf %38, %39 : vector<9x1xf32>
    %41 = vector.broadcast %40 : vector<9x1xf32> to vector<9x32xf32>
    %42 = arith.subf %36, %41 : vector<9x32xf32>
    %43 = arith.mulf %42, %42 : vector<9x32xf32>
    %cst_34 = arith.constant dense<0.000000e+00> : vector<9xf32>
    %44 = vector.multi_reduction <add>, %43, %cst_34 [1] : vector<9x32xf32> to vector<9xf32>
    %45 = vector.shape_cast %44 : vector<9xf32> to vector<9x1xf32>
    %cst_35 = arith.constant 3.200000e+01 : f32
    %46 = vector.broadcast %cst_35 : f32 to vector<9x1xf32>
    %47 = arith.divf %45, %46 : vector<9x1xf32>
    %cst_36 = arith.constant 9.99999974E-6 : f32
    %48 = vector.broadcast %cst_36 : f32 to vector<9x1xf32>
    %49 = arith.addf %47, %48 : vector<9x1xf32>
    %50 = math.rsqrt %49 : vector<9x1xf32>
    %51 = vector.broadcast %50 : vector<9x1xf32> to vector<9x32xf32>
    %52 = arith.mulf %42, %51 : vector<9x32xf32>
    %53 = vector.broadcast %6 : vector<1x32xf32> to vector<9x32xf32>
    %54 = arith.mulf %52, %53 : vector<9x32xf32>
    %55 = vector.broadcast %7 : vector<1x32xf32> to vector<9x32xf32>
    %56 = arith.addf %54, %55 : vector<9x32xf32>
    %cst_37 = arith.constant dense<0.000000e+00> : vector<9x32xf32>
    %57 = tpu.matmul %56, %8, %cst_37 {dimension_numbers = #tpu.dot_dimension_numbers<[1], [0], [0], [1], [0, 0, 1, 1], [], []>} : vector<9x32xf32>, vector<32x32xf32>, vector<9x32xf32> -> vector<9x32xf32>
    %58 = vector.broadcast %9 : vector<1x32xf32> to vector<9x32xf32>
    %59 = arith.addf %57, %58 : vector<9x32xf32>
    %cst_38 = arith.constant 0.000000e+00 : f32
    %60 = vector.broadcast %cst_38 : f32 to vector<9x32xf32>
    %61 = arith.maximumf %59, %60 : vector<9x32xf32>
    %cst_39 = arith.constant dense<0.000000e+00> : vector<9x32xf32>
    %62 = tpu.matmul %61, %10, %cst_39 {dimension_numbers = #tpu.dot_dimension_numbers<[1], [0], [0], [1], [0, 0, 1, 1], [], []>} : vector<9x32xf32>, vector<32x32xf32>, vector<9x32xf32> -> vector<9x32xf32>
    %63 = vector.broadcast %11 : vector<1x32xf32> to vector<9x32xf32>
    %64 = arith.addf %62, %63 : vector<9x32xf32>
    %65 = arith.addf %56, %64 : vector<9x32xf32>
    %cst_40 = arith.constant dense<0.000000e+00> : vector<9xf32>
    %66 = vector.multi_reduction <add>, %65, %cst_40 [1] : vector<9x32xf32> to vector<9xf32>
    %67 = vector.shape_cast %66 : vector<9xf32> to vector<9x1xf32>
    %cst_41 = arith.constant 3.200000e+01 : f32
    %68 = vector.broadcast %cst_41 : f32 to vector<9x1xf32>
    %69 = arith.divf %67, %68 : vector<9x1xf32>
    %70 = vector.broadcast %69 : vector<9x1xf32> to vector<9x32xf32>
    %71 = arith.subf %65, %70 : vector<9x32xf32>
    %72 = arith.mulf %71, %71 : vector<9x32xf32>
    %cst_42 = arith.constant dense<0.000000e+00> : vector<9xf32>
    %73 = vector.multi_reduction <add>, %72, %cst_42 [1] : vector<9x32xf32> to vector<9xf32>
    %74 = vector.shape_cast %73 : vector<9xf32> to vector<9x1xf32>
    %cst_43 = arith.constant 3.200000e+01 : f32
    %75 = vector.broadcast %cst_43 : f32 to vector<9x1xf32>
    %76 = arith.divf %74, %75 : vector<9x1xf32>
    %cst_44 = arith.constant 9.99999974E-6 : f32
    %77 = vector.broadcast %cst_44 : f32 to vector<9x1xf32>
    %78 = arith.addf %76, %77 : vector<9x1xf32>
    %79 = math.rsqrt %78 : vector<9x1xf32>
    %80 = vector.broadcast %79 : vector<9x1xf32> to vector<9x32xf32>
    %81 = arith.mulf %71, %80 : vector<9x32xf32>
    %82 = vector.broadcast %12 : vector<1x32xf32> to vector<9x32xf32>
    %83 = arith.mulf %81, %82 : vector<9x32xf32>
    %84 = vector.broadcast %13 : vector<1x32xf32> to vector<9x32xf32>
    %85 = arith.addf %83, %84 : vector<9x32xf32>
    %cst_45 = arith.constant dense<0.000000e+00> : vector<32xf32>
    %86 = vector.multi_reduction <add>, %85, %cst_45 [0] : vector<9x32xf32> to vector<32xf32>
    %87 = vector.shape_cast %86 : vector<32xf32> to vector<1x32xf32>
    %cst_46 = arith.constant 9.000000e+00 : f32
    %88 = vector.broadcast %cst_46 : f32 to vector<1x32xf32>
    %89 = arith.divf %87, %88 : vector<1x32xf32>
    %c0_47 = arith.constant 0 : index
    %c0_48 = arith.constant 0 : index
    %c0_49 = arith.constant 0 : index
    %90 = vector.load %arg14[%c0_47, %c0_48, %c0_49] : memref<1x1x32xf32, #tpu.memory_space<vmem>>, vector<1x1x32xf32>
    %91 = vector.shape_cast %90 : vector<1x1x32xf32> to vector<1x32xf32>
    %92 = vector.shape_cast %89 : vector<1x32xf32> to vector<1x1x32xf32>
    tpu.vector_store %arg14[%c0_47, %c0_48, %c0_49], %92 {strides = array<i32>} : memref<1x1x32xf32, #tpu.memory_space<vmem>>, vector<1x1x32xf32>,
    return
  }
  func.func @transform_0(%arg0: i32) -> (i32, i32, i32) {
    %c0_i32 = arith.constant 0 : i32
    %c0_i32_0 = arith.constant 0 : i32
    %c0_i32_1 = arith.constant 0 : i32
    return %arg0, %c0_i32, %c0_i32_0 : i32, i32, i32
  }
  func.func @transform_1(%arg0: i32) -> (i32, i32) {
    %c0_i32 = arith.constant 0 : i32
    %c0_i32_0 = arith.constant 0 : i32
    %c0_i32_1 = arith.constant 0 : i32
    return %c0_i32, %c0_i32_0 : i32, i32
  }
  func.func @transform_2(%arg0: i32) -> (i32, i32) {
    %c0_i32 = arith.constant 0 : i32
    %c0_i32_0 = arith.constant 0 : i32
    %c0_i32_1 = arith.constant 0 : i32
    return %c0_i32, %c0_i32_0 : i32, i32
  }
  func.func @transform_3(%arg0: i32) -> (i32, i32) {
    %c0_i32 = arith.constant 0 : i32
    %c0_i32_0 = arith.constant 0 : i32
    %c0_i32_1 = arith.constant 0 : i32
    return %c0_i32, %c0_i32_0 : i32, i32
  }
  func.func @transform_4(%arg0: i32) -> (i32, i32) {
    %c0_i32 = arith.constant 0 : i32
    %c0_i32_0 = arith.constant 0 : i32
    %c0_i32_1 = arith.constant 0 : i32
    return %c0_i32, %c0_i32_0 : i32, i32
  }
  func.func @transform_5(%arg0: i32) -> (i32, i32) {
    %c0_i32 = arith.constant 0 : i32
    %c0_i32_0 = arith.constant 0 : i32
    %c0_i32_1 = arith.constant 0 : i32
    return %c0_i32, %c0_i32_0 : i32, i32
  }
  func.func @transform_6(%arg0: i32) -> (i32, i32) {
    %c0_i32 = arith.constant 0 : i32
    %c0_i32_0 = arith.constant 0 : i32
    %c0_i32_1 = arith.constant 0 : i32
    return %c0_i32, %c0_i32_0 : i32, i32
  }
  func.func @transform_7(%arg0: i32) -> (i32, i32) {
    %c0_i32 = arith.constant 0 : i32
    %c0_i32_0 = arith.constant 0 : i32
    %c0_i32_1 = arith.constant 0 : i32
    return %c0_i32, %c0_i32_0 : i32, i32
  }
  func.func @transform_8(%arg0: i32) -> (i32, i32) {
    %c0_i32 = arith.constant 0 : i32
    %c0_i32_0 = arith.constant 0 : i32
    %c0_i32_1 = arith.constant 0 : i32
    return %c0_i32, %c0_i32_0 : i32, i32
  }
  func.func @transform_9(%arg0: i32) -> (i32, i32) {
    %c0_i32 = arith.constant 0 : i32
    %c0_i32_0 = arith.constant 0 : i32
    %c0_i32_1 = arith.constant 0 : i32
    return %c0_i32, %c0_i32_0 : i32, i32
  }
  func.func @transform_10(%arg0: i32) -> (i32, i32) {
    %c0_i32 = arith.constant 0 : i32
    %c0_i32_0 = arith.constant 0 : i32
    %c0_i32_1 = arith.constant 0 : i32
    return %c0_i32, %c0_i32_0 : i32, i32
  }
  func.func @transform_11(%arg0: i32) -> (i32, i32) {
    %c0_i32 = arith.constant 0 : i32
    %c0_i32_0 = arith.constant 0 : i32
    %c0_i32_1 = arith.constant 0 : i32
    return %c0_i32, %c0_i32_0 : i32, i32
  }
  func.func @transform_12(%arg0: i32) -> (i32, i32) {
    %c0_i32 = arith.constant 0 : i32
    %c0_i32_0 = arith.constant 0 : i32
    %c0_i32_1 = arith.constant 0 : i32
    return %c0_i32, %c0_i32_0 : i32, i32
  }
  func.func @transform_13(%arg0: i32) -> (i32, i32, i32) {
    %c0_i32 = arith.constant 0 : i32
    %c0_i32_0 = arith.constant 0 : i32
    %c0_i32_1 = arith.constant 0 : i32
    return %arg0, %c0_i32, %c0_i32_0 : i32, i32, i32
  }
}

module attributes {stable_mosaic.version = 11 : i64} {
  func.func @_patch_embed_kernel(%arg0: i32, %arg1: memref<9x72xf32, #tpu.memory_space<vmem>>, %arg2: memref<72x32xf32, #tpu.memory_space<vmem>>, %arg3: memref<1x32xf32, #tpu.memory_space<vmem>>, %arg4: memref<9x1xf32, #tpu.memory_space<vmem>>, %arg5: memref<9x32xf32, #tpu.memory_space<vmem>>) attributes {dimension_semantics = [#tpu.dimension_semantics<arbitrary>], iteration_bounds = array<i64: 1>, scalar_prefetch = 0 : i64, scratch_operands = 0 : i64, tpu.core_type = #tpu.core_type<tc>, window_params = [{pipeline_mode = #tpu.pipeline_mode<synchronous>, transform_indices = @transform_0, window_bounds = array<i64: 9, 72>}, {pipeline_mode = #tpu.pipeline_mode<synchronous>, transform_indices = @transform_1, window_bounds = array<i64: 72, 32>}, {pipeline_mode = #tpu.pipeline_mode<synchronous>, transform_indices = @transform_2, window_bounds = array<i64: 1, 32>}, {pipeline_mode = #tpu.pipeline_mode<synchronous>, transform_indices = @transform_3, window_bounds = array<i64: 9, 1>}, {pipeline_mode = #tpu.pipeline_mode<synchronous>, transform_indices = @transform_4, window_bounds = array<i64: 9, 32>}]} {
    %c0 = arith.constant 0 : index
    %c0_0 = arith.constant 0 : index
    %0 = vector.load %arg1[%c0, %c0_0] : memref<9x72xf32, #tpu.memory_space<vmem>>, vector<9x72xf32>
    %c0_1 = arith.constant 0 : index
    %c0_2 = arith.constant 0 : index
    %1 = vector.load %arg2[%c0_1, %c0_2] : memref<72x32xf32, #tpu.memory_space<vmem>>, vector<72x32xf32>
    %cst = arith.constant dense<0.000000e+00> : vector<9x32xf32>
    %2 = tpu.matmul %0, %1, %cst {dimension_numbers = #tpu.dot_dimension_numbers<[1], [0], [0], [1], [0, 0, 1, 1], [], []>} : vector<9x72xf32>, vector<72x32xf32>, vector<9x32xf32> -> vector<9x32xf32>
    %c0_3 = arith.constant 0 : index
    %c0_4 = arith.constant 0 : index
    %3 = vector.load %arg3[%c0_3, %c0_4] : memref<1x32xf32, #tpu.memory_space<vmem>>, vector<1x32xf32>
    %4 = vector.broadcast %3 : vector<1x32xf32> to vector<9x32xf32>
    %5 = arith.addf %2, %4 : vector<9x32xf32>
    %c0_5 = arith.constant 0 : index
    %c0_6 = arith.constant 0 : index
    %6 = vector.load %arg4[%c0_5, %c0_6] : memref<9x1xf32, #tpu.memory_space<vmem>>, vector<9x1xf32>
    %7 = vector.broadcast %6 : vector<9x1xf32> to vector<9x32xf32>
    %8 = arith.addf %5, %7 : vector<9x32xf32>
    %c0_7 = arith.constant 0 : index
    %c0_8 = arith.constant 0 : index
    %9 = vector.load %arg5[%c0_7, %c0_8] : memref<9x32xf32, #tpu.memory_space<vmem>>, vector<9x32xf32>
    tpu.vector_store %arg5[%c0_7, %c0_8], %8 {strides = array<i32>} : memref<9x32xf32, #tpu.memory_space<vmem>>, vector<9x32xf32>,
    return
  }
  func.func @transform_0(%arg0: i32) -> (i32, i32) {
    %c0_i32 = arith.constant 0 : i32
    %c0_i32_0 = arith.constant 0 : i32
    %c0_i32_1 = arith.constant 0 : i32
    return %c0_i32, %c0_i32_0 : i32, i32
  }
  func.func @transform_1(%arg0: i32) -> (i32, i32) {
    %c0_i32 = arith.constant 0 : i32
    %c0_i32_0 = arith.constant 0 : i32
    %c0_i32_1 = arith.constant 0 : i32
    return %c0_i32, %c0_i32_0 : i32, i32
  }
  func.func @transform_2(%arg0: i32) -> (i32, i32) {
    %c0_i32 = arith.constant 0 : i32
    %c0_i32_0 = arith.constant 0 : i32
    %c0_i32_1 = arith.constant 0 : i32
    return %c0_i32, %c0_i32_0 : i32, i32
  }
  func.func @transform_3(%arg0: i32) -> (i32, i32) {
    %c0_i32 = arith.constant 0 : i32
    %c0_i32_0 = arith.constant 0 : i32
    %c0_i32_1 = arith.constant 0 : i32
    return %c0_i32, %c0_i32_0 : i32, i32
  }
  func.func @transform_4(%arg0: i32) -> (i32, i32) {
    %c0_i32 = arith.constant 0 : i32
    %c0_i32_0 = arith.constant 0 : i32
    %c0_i32_1 = arith.constant 0 : i32
    return %c0_i32, %c0_i32_0 : i32, i32
  }
}

module attributes {stable_mosaic.version = 11 : i64} {
  func.func @_aggregate_kernel(%arg0: i32, %arg1: memref<2x32xf32, #tpu.memory_space<vmem>>, %arg2: memref<1x32xf32, #tpu.memory_space<vmem>>, %arg3: memref<1x32x96xf32, #tpu.memory_space<vmem>>, %arg4: memref<1x1x96xf32, #tpu.memory_space<vmem>>, %arg5: memref<1x32x32xf32, #tpu.memory_space<vmem>>, %arg6: memref<1x1x32xf32, #tpu.memory_space<vmem>>, %arg7: memref<1x1x32xf32, #tpu.memory_space<vmem>>, %arg8: memref<1x1x32xf32, #tpu.memory_space<vmem>>, %arg9: memref<1x32x32xf32, #tpu.memory_space<vmem>>, %arg10: memref<1x1x32xf32, #tpu.memory_space<vmem>>, %arg11: memref<1x32x32xf32, #tpu.memory_space<vmem>>, %arg12: memref<1x1x32xf32, #tpu.memory_space<vmem>>, %arg13: memref<1x1x32xf32, #tpu.memory_space<vmem>>, %arg14: memref<1x1x32xf32, #tpu.memory_space<vmem>>, %arg15: memref<32x1xf32, #tpu.memory_space<vmem>>, %arg16: memref<1x1xf32, #tpu.memory_space<vmem>>, %arg17: memref<2x1xf32, #tpu.memory_space<vmem>>) attributes {dimension_semantics = [#tpu.dimension_semantics<arbitrary>], iteration_bounds = array<i64: 1>, scalar_prefetch = 0 : i64, scratch_operands = 0 : i64, tpu.core_type = #tpu.core_type<tc>, window_params = [{pipeline_mode = #tpu.pipeline_mode<synchronous>, transform_indices = @transform_0, window_bounds = array<i64: 2, 32>}, {pipeline_mode = #tpu.pipeline_mode<synchronous>, transform_indices = @transform_1, window_bounds = array<i64: 1, 32>}, {pipeline_mode = #tpu.pipeline_mode<synchronous>, transform_indices = @transform_2, window_bounds = array<i64: 1, 32, 96>}, {pipeline_mode = #tpu.pipeline_mode<synchronous>, transform_indices = @transform_3, window_bounds = array<i64: 1, 1, 96>}, {pipeline_mode = #tpu.pipeline_mode<synchronous>, transform_indices = @transform_4, window_bounds = array<i64: 1, 32, 32>}, {pipeline_mode = #tpu.pipeline_mode<synchronous>, transform_indices = @transform_5, window_bounds = array<i64: 1, 1, 32>}, {pipeline_mode = #tpu.pipeline_mode<synchronous>, transform_indices = @transform_6, window_bounds = array<i64: 1, 1, 32>}, {pipeline_mode = #tpu.pipeline_mode<synchronous>, transform_indices = @transform_7, window_bounds = array<i64: 1, 1, 32>}, {pipeline_mode = #tpu.pipeline_mode<synchronous>, transform_indices = @transform_8, window_bounds = array<i64: 1, 32, 32>}, {pipeline_mode = #tpu.pipeline_mode<synchronous>, transform_indices = @transform_9, window_bounds = array<i64: 1, 1, 32>}, {pipeline_mode = #tpu.pipeline_mode<synchronous>, transform_indices = @transform_10, window_bounds = array<i64: 1, 32, 32>}, {pipeline_mode = #tpu.pipeline_mode<synchronous>, transform_indices = @transform_11, window_bounds = array<i64: 1, 1, 32>}, {pipeline_mode = #tpu.pipeline_mode<synchronous>, transform_indices = @transform_12, window_bounds = array<i64: 1, 1, 32>}, {pipeline_mode = #tpu.pipeline_mode<synchronous>, transform_indices = @transform_13, window_bounds = array<i64: 1, 1, 32>}, {pipeline_mode = #tpu.pipeline_mode<synchronous>, transform_indices = @transform_14, window_bounds = array<i64: 32, 1>}, {pipeline_mode = #tpu.pipeline_mode<synchronous>, transform_indices = @transform_15, window_bounds = array<i64: 1, 1>}, {pipeline_mode = #tpu.pipeline_mode<synchronous>, transform_indices = @transform_16, window_bounds = array<i64: 2, 1>}]} {
    %c0 = arith.constant 0 : index
    %c0_0 = arith.constant 0 : index
    %0 = vector.load %arg1[%c0, %c0_0] : memref<2x32xf32, #tpu.memory_space<vmem>>, vector<2x32xf32>
    %c0_1 = arith.constant 0 : index
    %c0_2 = arith.constant 0 : index
    %1 = vector.load %arg2[%c0_1, %c0_2] : memref<1x32xf32, #tpu.memory_space<vmem>>, vector<1x32xf32>
    %2 = vector.broadcast %1 : vector<1x32xf32> to vector<2x32xf32>
    %3 = arith.addf %0, %2 : vector<2x32xf32>
    %c0_3 = arith.constant 0 : index
    %c0_4 = arith.constant 0 : index
    %c0_5 = arith.constant 0 : index
    %4 = vector.load %arg3[%c0_3, %c0_4, %c0_5] : memref<1x32x96xf32, #tpu.memory_space<vmem>>, vector<1x32x96xf32>
    %5 = vector.shape_cast %4 : vector<1x32x96xf32> to vector<32x96xf32>
    %c0_6 = arith.constant 0 : index
    %c0_7 = arith.constant 0 : index
    %c0_8 = arith.constant 0 : index
    %6 = vector.load %arg4[%c0_6, %c0_7, %c0_8] : memref<1x1x96xf32, #tpu.memory_space<vmem>>, vector<1x1x96xf32>
    %7 = vector.shape_cast %6 : vector<1x1x96xf32> to vector<1x96xf32>
    %c0_9 = arith.constant 0 : index
    %c0_10 = arith.constant 0 : index
    %c0_11 = arith.constant 0 : index
    %8 = vector.load %arg5[%c0_9, %c0_10, %c0_11] : memref<1x32x32xf32, #tpu.memory_space<vmem>>, vector<1x32x32xf32>
    %9 = vector.shape_cast %8 : vector<1x32x32xf32> to vector<32x32xf32>
    %c0_12 = arith.constant 0 : index
    %c0_13 = arith.constant 0 : index
    %c0_14 = arith.constant 0 : index
    %10 = vector.load %arg6[%c0_12, %c0_13, %c0_14] : memref<1x1x32xf32, #tpu.memory_space<vmem>>, vector<1x1x32xf32>
    %11 = vector.shape_cast %10 : vector<1x1x32xf32> to vector<1x32xf32>
    %c0_15 = arith.constant 0 : index
    %c0_16 = arith.constant 0 : index
    %c0_17 = arith.constant 0 : index
    %12 = vector.load %arg7[%c0_15, %c0_16, %c0_17] : memref<1x1x32xf32, #tpu.memory_space<vmem>>, vector<1x1x32xf32>
    %13 = vector.shape_cast %12 : vector<1x1x32xf32> to vector<1x32xf32>
    %c0_18 = arith.constant 0 : index
    %c0_19 = arith.constant 0 : index
    %c0_20 = arith.constant 0 : index
    %14 = vector.load %arg8[%c0_18, %c0_19, %c0_20] : memref<1x1x32xf32, #tpu.memory_space<vmem>>, vector<1x1x32xf32>
    %15 = vector.shape_cast %14 : vector<1x1x32xf32> to vector<1x32xf32>
    %c0_21 = arith.constant 0 : index
    %c0_22 = arith.constant 0 : index
    %c0_23 = arith.constant 0 : index
    %16 = vector.load %arg9[%c0_21, %c0_22, %c0_23] : memref<1x32x32xf32, #tpu.memory_space<vmem>>, vector<1x32x32xf32>
    %17 = vector.shape_cast %16 : vector<1x32x32xf32> to vector<32x32xf32>
    %c0_24 = arith.constant 0 : index
    %c0_25 = arith.constant 0 : index
    %c0_26 = arith.constant 0 : index
    %18 = vector.load %arg10[%c0_24, %c0_25, %c0_26] : memref<1x1x32xf32, #tpu.memory_space<vmem>>, vector<1x1x32xf32>
    %19 = vector.shape_cast %18 : vector<1x1x32xf32> to vector<1x32xf32>
    %c0_27 = arith.constant 0 : index
    %c0_28 = arith.constant 0 : index
    %c0_29 = arith.constant 0 : index
    %20 = vector.load %arg11[%c0_27, %c0_28, %c0_29] : memref<1x32x32xf32, #tpu.memory_space<vmem>>, vector<1x32x32xf32>
    %21 = vector.shape_cast %20 : vector<1x32x32xf32> to vector<32x32xf32>
    %c0_30 = arith.constant 0 : index
    %c0_31 = arith.constant 0 : index
    %c0_32 = arith.constant 0 : index
    %22 = vector.load %arg12[%c0_30, %c0_31, %c0_32] : memref<1x1x32xf32, #tpu.memory_space<vmem>>, vector<1x1x32xf32>
    %23 = vector.shape_cast %22 : vector<1x1x32xf32> to vector<1x32xf32>
    %c0_33 = arith.constant 0 : index
    %c0_34 = arith.constant 0 : index
    %c0_35 = arith.constant 0 : index
    %24 = vector.load %arg13[%c0_33, %c0_34, %c0_35] : memref<1x1x32xf32, #tpu.memory_space<vmem>>, vector<1x1x32xf32>
    %25 = vector.shape_cast %24 : vector<1x1x32xf32> to vector<1x32xf32>
    %c0_36 = arith.constant 0 : index
    %c0_37 = arith.constant 0 : index
    %c0_38 = arith.constant 0 : index
    %26 = vector.load %arg14[%c0_36, %c0_37, %c0_38] : memref<1x1x32xf32, #tpu.memory_space<vmem>>, vector<1x1x32xf32>
    %27 = vector.shape_cast %26 : vector<1x1x32xf32> to vector<1x32xf32>
    %cst = arith.constant dense<0.000000e+00> : vector<2x96xf32>
    %28 = tpu.matmul %3, %5, %cst {dimension_numbers = #tpu.dot_dimension_numbers<[1], [0], [0], [1], [0, 0, 1, 1], [], []>} : vector<2x32xf32>, vector<32x96xf32>, vector<2x96xf32> -> vector<2x96xf32>
    %29 = vector.broadcast %7 : vector<1x96xf32> to vector<2x96xf32>
    %30 = arith.addf %28, %29 : vector<2x96xf32>
    %31 = vector.extract_strided_slice %30 {offsets = [0, 0], sizes = [2, 32], strides = [1, 1]} : vector<2x96xf32> to vector<2x32xf32>
    %32 = vector.extract_strided_slice %30 {offsets = [0, 32], sizes = [2, 32], strides = [1, 1]} : vector<2x96xf32> to vector<2x32xf32>
    %33 = vector.extract_strided_slice %30 {offsets = [0, 64], sizes = [2, 32], strides = [1, 1]} : vector<2x96xf32> to vector<2x32xf32>
    %cst_39 = arith.constant 0.176776692 : f32
    %34 = vector.broadcast %cst_39 : f32 to vector<2x32xf32>
    %35 = arith.mulf %31, %34 : vector<2x32xf32>
    %cst_40 = arith.constant dense<0.000000e+00> : vector<2x2xf32>
    %36 = tpu.matmul %35, %32, %cst_40 {dimension_numbers = #tpu.dot_dimension_numbers<[1], [1], [0], [0], [0, 0, 1, 0], [], []>} : vector<2x32xf32>, vector<2x32xf32>, vector<2x2xf32> -> vector<2x2xf32>
    %cst_41 = arith.constant dense<0xFF800000> : vector<2xf32>
    %37 = vector.multi_reduction <maximumf>, %36, %cst_41 [1] : vector<2x2xf32> to vector<2xf32>
    %38 = vector.shape_cast %37 : vector<2xf32> to vector<2x1xf32>
    %39 = vector.broadcast %38 : vector<2x1xf32> to vector<2x2xf32>
    %40 = arith.subf %36, %39 : vector<2x2xf32>
    %41 = math.exp %40 : vector<2x2xf32>
    %cst_42 = arith.constant dense<0.000000e+00> : vector<2xf32>
    %42 = vector.multi_reduction <add>, %41, %cst_42 [1] : vector<2x2xf32> to vector<2xf32>
    %43 = vector.shape_cast %42 : vector<2xf32> to vector<2x1xf32>
    %44 = vector.broadcast %43 : vector<2x1xf32> to vector<2x2xf32>
    %45 = arith.divf %41, %44 : vector<2x2xf32>
    %cst_43 = arith.constant dense<0.000000e+00> : vector<2x32xf32>
    %46 = tpu.matmul %45, %33, %cst_43 {dimension_numbers = #tpu.dot_dimension_numbers<[1], [0], [0], [1], [0, 0, 1, 1], [], []>} : vector<2x2xf32>, vector<2x32xf32>, vector<2x32xf32> -> vector<2x32xf32>
    %cst_44 = arith.constant dense<0.000000e+00> : vector<2x32xf32>
    %47 = tpu.matmul %46, %9, %cst_44 {dimension_numbers = #tpu.dot_dimension_numbers<[1], [0], [0], [1], [0, 0, 1, 1], [], []>} : vector<2x32xf32>, vector<32x32xf32>, vector<2x32xf32> -> vector<2x32xf32>
    %48 = vector.broadcast %11 : vector<1x32xf32> to vector<2x32xf32>
    %49 = arith.addf %47, %48 : vector<2x32xf32>
    %50 = arith.addf %3, %49 : vector<2x32xf32>
    %cst_45 = arith.constant dense<0.000000e+00> : vector<2xf32>
    %51 = vector.multi_reduction <add>, %50, %cst_45 [1] : vector<2x32xf32> to vector<2xf32>
    %52 = vector.shape_cast %51 : vector<2xf32> to vector<2x1xf32>
    %cst_46 = arith.constant 3.200000e+01 : f32
    %53 = vector.broadcast %cst_46 : f32 to vector<2x1xf32>
    %54 = arith.divf %52, %53 : vector<2x1xf32>
    %55 = vector.broadcast %54 : vector<2x1xf32> to vector<2x32xf32>
    %56 = arith.subf %50, %55 : vector<2x32xf32>
    %57 = arith.mulf %56, %56 : vector<2x32xf32>
    %cst_47 = arith.constant dense<0.000000e+00> : vector<2xf32>
    %58 = vector.multi_reduction <add>, %57, %cst_47 [1] : vector<2x32xf32> to vector<2xf32>
    %59 = vector.shape_cast %58 : vector<2xf32> to vector<2x1xf32>
    %cst_48 = arith.constant 3.200000e+01 : f32
    %60 = vector.broadcast %cst_48 : f32 to vector<2x1xf32>
    %61 = arith.divf %59, %60 : vector<2x1xf32>
    %cst_49 = arith.constant 9.99999974E-6 : f32
    %62 = vector.broadcast %cst_49 : f32 to vector<2x1xf32>
    %63 = arith.addf %61, %62 : vector<2x1xf32>
    %64 = math.rsqrt %63 : vector<2x1xf32>
    %65 = vector.broadcast %64 : vector<2x1xf32> to vector<2x32xf32>
    %66 = arith.mulf %56, %65 : vector<2x32xf32>
    %67 = vector.broadcast %13 : vector<1x32xf32> to vector<2x32xf32>
    %68 = arith.mulf %66, %67 : vector<2x32xf32>
    %69 = vector.broadcast %15 : vector<1x32xf32> to vector<2x32xf32>
    %70 = arith.addf %68, %69 : vector<2x32xf32>
    %cst_50 = arith.constant dense<0.000000e+00> : vector<2x32xf32>
    %71 = tpu.matmul %70, %17, %cst_50 {dimension_numbers = #tpu.dot_dimension_numbers<[1], [0], [0], [1], [0, 0, 1, 1], [], []>} : vector<2x32xf32>, vector<32x32xf32>, vector<2x32xf32> -> vector<2x32xf32>
    %72 = vector.broadcast %19 : vector<1x32xf32> to vector<2x32xf32>
    %73 = arith.addf %71, %72 : vector<2x32xf32>
    %cst_51 = arith.constant 0.000000e+00 : f32
    %74 = vector.broadcast %cst_51 : f32 to vector<2x32xf32>
    %75 = arith.maximumf %73, %74 : vector<2x32xf32>
    %cst_52 = arith.constant dense<0.000000e+00> : vector<2x32xf32>
    %76 = tpu.matmul %75, %21, %cst_52 {dimension_numbers = #tpu.dot_dimension_numbers<[1], [0], [0], [1], [0, 0, 1, 1], [], []>} : vector<2x32xf32>, vector<32x32xf32>, vector<2x32xf32> -> vector<2x32xf32>
    %77 = vector.broadcast %23 : vector<1x32xf32> to vector<2x32xf32>
    %78 = arith.addf %76, %77 : vector<2x32xf32>
    %79 = arith.addf %70, %78 : vector<2x32xf32>
    %cst_53 = arith.constant dense<0.000000e+00> : vector<2xf32>
    %80 = vector.multi_reduction <add>, %79, %cst_53 [1] : vector<2x32xf32> to vector<2xf32>
    %81 = vector.shape_cast %80 : vector<2xf32> to vector<2x1xf32>
    %cst_54 = arith.constant 3.200000e+01 : f32
    %82 = vector.broadcast %cst_54 : f32 to vector<2x1xf32>
    %83 = arith.divf %81, %82 : vector<2x1xf32>
    %84 = vector.broadcast %83 : vector<2x1xf32> to vector<2x32xf32>
    %85 = arith.subf %79, %84 : vector<2x32xf32>
    %86 = arith.mulf %85, %85 : vector<2x32xf32>
    %cst_55 = arith.constant dense<0.000000e+00> : vector<2xf32>
    %87 = vector.multi_reduction <add>, %86, %cst_55 [1] : vector<2x32xf32> to vector<2xf32>
    %88 = vector.shape_cast %87 : vector<2xf32> to vector<2x1xf32>
    %cst_56 = arith.constant 3.200000e+01 : f32
    %89 = vector.broadcast %cst_56 : f32 to vector<2x1xf32>
    %90 = arith.divf %88, %89 : vector<2x1xf32>
    %cst_57 = arith.constant 9.99999974E-6 : f32
    %91 = vector.broadcast %cst_57 : f32 to vector<2x1xf32>
    %92 = arith.addf %90, %91 : vector<2x1xf32>
    %93 = math.rsqrt %92 : vector<2x1xf32>
    %94 = vector.broadcast %93 : vector<2x1xf32> to vector<2x32xf32>
    %95 = arith.mulf %85, %94 : vector<2x32xf32>
    %96 = vector.broadcast %25 : vector<1x32xf32> to vector<2x32xf32>
    %97 = arith.mulf %95, %96 : vector<2x32xf32>
    %98 = vector.broadcast %27 : vector<1x32xf32> to vector<2x32xf32>
    %99 = arith.addf %97, %98 : vector<2x32xf32>
    %c0_58 = arith.constant 0 : index
    %c0_59 = arith.constant 0 : index
    %100 = vector.load %arg15[%c0_58, %c0_59] : memref<32x1xf32, #tpu.memory_space<vmem>>, vector<32x1xf32>
    %cst_60 = arith.constant dense<0.000000e+00> : vector<2x1xf32>
    %101 = tpu.matmul %99, %100, %cst_60 {dimension_numbers = #tpu.dot_dimension_numbers<[1], [0], [0], [1], [0, 0, 1, 1], [], []>} : vector<2x32xf32>, vector<32x1xf32>, vector<2x1xf32> -> vector<2x1xf32>
    %c0_61 = arith.constant 0 : index
    %c0_62 = arith.constant 0 : index
    %102 = vector.load %arg16[%c0_61, %c0_62] : memref<1x1xf32, #tpu.memory_space<vmem>>, vector<1x1xf32>
    %103 = vector.broadcast %102 : vector<1x1xf32> to vector<2x1xf32>
    %104 = arith.addf %101, %103 : vector<2x1xf32>
    %c0_63 = arith.constant 0 : index
    %c0_64 = arith.constant 0 : index
    %105 = vector.load %arg17[%c0_63, %c0_64] : memref<2x1xf32, #tpu.memory_space<vmem>>, vector<2x1xf32>
    tpu.vector_store %arg17[%c0_63, %c0_64], %104 {strides = array<i32>} : memref<2x1xf32, #tpu.memory_space<vmem>>, vector<2x1xf32>,
    return
  }
  func.func @transform_0(%arg0: i32) -> (i32, i32) {
    %c0_i32 = arith.constant 0 : i32
    %c0_i32_0 = arith.constant 0 : i32
    %c0_i32_1 = arith.constant 0 : i32
    return %c0_i32, %c0_i32_0 : i32, i32
  }
  func.func @transform_1(%arg0: i32) -> (i32, i32) {
    %c0_i32 = arith.constant 0 : i32
    %c0_i32_0 = arith.constant 0 : i32
    %c0_i32_1 = arith.constant 0 : i32
    return %c0_i32, %c0_i32_0 : i32, i32
  }
  func.func @transform_2(%arg0: i32) -> (i32, i32, i32) {
    %c0_i32 = arith.constant 0 : i32
    %c0_i32_0 = arith.constant 0 : i32
    %c0_i32_1 = arith.constant 0 : i32
    %c0_i32_2 = arith.constant 0 : i32
    return %c0_i32, %c0_i32_0, %c0_i32_1 : i32, i32, i32
  }
  func.func @transform_3(%arg0: i32) -> (i32, i32, i32) {
    %c0_i32 = arith.constant 0 : i32
    %c0_i32_0 = arith.constant 0 : i32
    %c0_i32_1 = arith.constant 0 : i32
    %c0_i32_2 = arith.constant 0 : i32
    return %c0_i32, %c0_i32_0, %c0_i32_1 : i32, i32, i32
  }
  func.func @transform_4(%arg0: i32) -> (i32, i32, i32) {
    %c0_i32 = arith.constant 0 : i32
    %c0_i32_0 = arith.constant 0 : i32
    %c0_i32_1 = arith.constant 0 : i32
    %c0_i32_2 = arith.constant 0 : i32
    return %c0_i32, %c0_i32_0, %c0_i32_1 : i32, i32, i32
  }
  func.func @transform_5(%arg0: i32) -> (i32, i32, i32) {
    %c0_i32 = arith.constant 0 : i32
    %c0_i32_0 = arith.constant 0 : i32
    %c0_i32_1 = arith.constant 0 : i32
    %c0_i32_2 = arith.constant 0 : i32
    return %c0_i32, %c0_i32_0, %c0_i32_1 : i32, i32, i32
  }
  func.func @transform_6(%arg0: i32) -> (i32, i32, i32) {
    %c0_i32 = arith.constant 0 : i32
    %c0_i32_0 = arith.constant 0 : i32
    %c0_i32_1 = arith.constant 0 : i32
    %c0_i32_2 = arith.constant 0 : i32
    return %c0_i32, %c0_i32_0, %c0_i32_1 : i32, i32, i32
  }
  func.func @transform_7(%arg0: i32) -> (i32, i32, i32) {
    %c0_i32 = arith.constant 0 : i32
    %c0_i32_0 = arith.constant 0 : i32
    %c0_i32_1 = arith.constant 0 : i32
    %c0_i32_2 = arith.constant 0 : i32
    return %c0_i32, %c0_i32_0, %c0_i32_1 : i32, i32, i32
  }
  func.func @transform_8(%arg0: i32) -> (i32, i32, i32) {
    %c0_i32 = arith.constant 0 : i32
    %c0_i32_0 = arith.constant 0 : i32
    %c0_i32_1 = arith.constant 0 : i32
    %c0_i32_2 = arith.constant 0 : i32
    return %c0_i32, %c0_i32_0, %c0_i32_1 : i32, i32, i32
  }
  func.func @transform_9(%arg0: i32) -> (i32, i32, i32) {
    %c0_i32 = arith.constant 0 : i32
    %c0_i32_0 = arith.constant 0 : i32
    %c0_i32_1 = arith.constant 0 : i32
    %c0_i32_2 = arith.constant 0 : i32
    return %c0_i32, %c0_i32_0, %c0_i32_1 : i32, i32, i32
  }
  func.func @transform_10(%arg0: i32) -> (i32, i32, i32) {
    %c0_i32 = arith.constant 0 : i32
    %c0_i32_0 = arith.constant 0 : i32
    %c0_i32_1 = arith.constant 0 : i32
    %c0_i32_2 = arith.constant 0 : i32
    return %c0_i32, %c0_i32_0, %c0_i32_1 : i32, i32, i32
  }
  func.func @transform_11(%arg0: i32) -> (i32, i32, i32) {
    %c0_i32 = arith.constant 0 : i32
    %c0_i32_0 = arith.constant 0 : i32
    %c0_i32_1 = arith.constant 0 : i32
    %c0_i32_2 = arith.constant 0 : i32
    return %c0_i32, %c0_i32_0, %c0_i32_1 : i32, i32, i32
  }
  func.func @transform_12(%arg0: i32) -> (i32, i32, i32) {
    %c0_i32 = arith.constant 0 : i32
    %c0_i32_0 = arith.constant 0 : i32
    %c0_i32_1 = arith.constant 0 : i32
    %c0_i32_2 = arith.constant 0 : i32
    return %c0_i32, %c0_i32_0, %c0_i32_1 : i32, i32, i32
  }
  func.func @transform_13(%arg0: i32) -> (i32, i32, i32) {
    %c0_i32 = arith.constant 0 : i32
    %c0_i32_0 = arith.constant 0 : i32
    %c0_i32_1 = arith.constant 0 : i32
    %c0_i32_2 = arith.constant 0 : i32
    return %c0_i32, %c0_i32_0, %c0_i32_1 : i32, i32, i32
  }
  func.func @transform_14(%arg0: i32) -> (i32, i32) {
    %c0_i32 = arith.constant 0 : i32
    %c0_i32_0 = arith.constant 0 : i32
    %c0_i32_1 = arith.constant 0 : i32
    return %c0_i32, %c0_i32_0 : i32, i32
  }
  func.func @transform_15(%arg0: i32) -> (i32, i32) {
    %c0_i32 = arith.constant 0 : i32
    %c0_i32_0 = arith.constant 0 : i32
    %c0_i32_1 = arith.constant 0 : i32
    return %c0_i32, %c0_i32_0 : i32, i32
  }
  func.func @transform_16(%arg0: i32) -> (i32, i32) {
    %c0_i32 = arith.constant 0 : i32
    %c0_i32_0 = arith.constant 0 : i32
    %c0_i32_1 = arith.constant 0 : i32
    return %c0_i32, %c0_i32_0 : i32, i32
  }
}

module attributes {stable_mosaic.version = 11 : i64} {
  func.func @_encoder_mean_kernel(%arg0: i32, %arg1: memref<1x9x32xf32, #tpu.memory_space<vmem>>, %arg2: memref<32x96xf32, #tpu.memory_space<vmem>>, %arg3: memref<1x96xf32, #tpu.memory_space<vmem>>, %arg4: memref<32x32xf32, #tpu.memory_space<vmem>>, %arg5: memref<1x32xf32, #tpu.memory_space<vmem>>, %arg6: memref<1x32xf32, #tpu.memory_space<vmem>>, %arg7: memref<1x32xf32, #tpu.memory_space<vmem>>, %arg8: memref<32x32xf32, #tpu.memory_space<vmem>>, %arg9: memref<1x32xf32, #tpu.memory_space<vmem>>, %arg10: memref<32x32xf32, #tpu.memory_space<vmem>>, %arg11: memref<1x32xf32, #tpu.memory_space<vmem>>, %arg12: memref<1x32xf32, #tpu.memory_space<vmem>>, %arg13: memref<1x32xf32, #tpu.memory_space<vmem>>, %arg14: memref<1x1x32xf32, #tpu.memory_space<vmem>>) attributes {dimension_semantics = [#tpu.dimension_semantics<parallel>], iteration_bounds = array<i64: 1>, scalar_prefetch = 0 : i64, scratch_operands = 0 : i64, tpu.core_type = #tpu.core_type<tc>, window_params = [{transform_indices = @transform_0, window_bounds = array<i64: 1, 9, 32>}, {pipeline_mode = #tpu.pipeline_mode<synchronous>, transform_indices = @transform_1, window_bounds = array<i64: 32, 96>}, {pipeline_mode = #tpu.pipeline_mode<synchronous>, transform_indices = @transform_2, window_bounds = array<i64: 1, 96>}, {pipeline_mode = #tpu.pipeline_mode<synchronous>, transform_indices = @transform_3, window_bounds = array<i64: 32, 32>}, {pipeline_mode = #tpu.pipeline_mode<synchronous>, transform_indices = @transform_4, window_bounds = array<i64: 1, 32>}, {pipeline_mode = #tpu.pipeline_mode<synchronous>, transform_indices = @transform_5, window_bounds = array<i64: 1, 32>}, {pipeline_mode = #tpu.pipeline_mode<synchronous>, transform_indices = @transform_6, window_bounds = array<i64: 1, 32>}, {pipeline_mode = #tpu.pipeline_mode<synchronous>, transform_indices = @transform_7, window_bounds = array<i64: 32, 32>}, {pipeline_mode = #tpu.pipeline_mode<synchronous>, transform_indices = @transform_8, window_bounds = array<i64: 1, 32>}, {pipeline_mode = #tpu.pipeline_mode<synchronous>, transform_indices = @transform_9, window_bounds = array<i64: 32, 32>}, {pipeline_mode = #tpu.pipeline_mode<synchronous>, transform_indices = @transform_10, window_bounds = array<i64: 1, 32>}, {pipeline_mode = #tpu.pipeline_mode<synchronous>, transform_indices = @transform_11, window_bounds = array<i64: 1, 32>}, {pipeline_mode = #tpu.pipeline_mode<synchronous>, transform_indices = @transform_12, window_bounds = array<i64: 1, 32>}, {transform_indices = @transform_13, window_bounds = array<i64: 1, 1, 32>}]} {
    %c0 = arith.constant 0 : index
    %c0_0 = arith.constant 0 : index
    %c0_1 = arith.constant 0 : index
    %0 = vector.load %arg1[%c0, %c0_0, %c0_1] : memref<1x9x32xf32, #tpu.memory_space<vmem>>, vector<1x9x32xf32>
    %1 = vector.shape_cast %0 : vector<1x9x32xf32> to vector<9x32xf32>
    %c0_2 = arith.constant 0 : index
    %c0_3 = arith.constant 0 : index
    %2 = vector.load %arg2[%c0_2, %c0_3] : memref<32x96xf32, #tpu.memory_space<vmem>>, vector<32x96xf32>
    %c0_4 = arith.constant 0 : index
    %c0_5 = arith.constant 0 : index
    %3 = vector.load %arg3[%c0_4, %c0_5] : memref<1x96xf32, #tpu.memory_space<vmem>>, vector<1x96xf32>
    %c0_6 = arith.constant 0 : index
    %c0_7 = arith.constant 0 : index
    %4 = vector.load %arg4[%c0_6, %c0_7] : memref<32x32xf32, #tpu.memory_space<vmem>>, vector<32x32xf32>
    %c0_8 = arith.constant 0 : index
    %c0_9 = arith.constant 0 : index
    %5 = vector.load %arg5[%c0_8, %c0_9] : memref<1x32xf32, #tpu.memory_space<vmem>>, vector<1x32xf32>
    %c0_10 = arith.constant 0 : index
    %c0_11 = arith.constant 0 : index
    %6 = vector.load %arg6[%c0_10, %c0_11] : memref<1x32xf32, #tpu.memory_space<vmem>>, vector<1x32xf32>
    %c0_12 = arith.constant 0 : index
    %c0_13 = arith.constant 0 : index
    %7 = vector.load %arg7[%c0_12, %c0_13] : memref<1x32xf32, #tpu.memory_space<vmem>>, vector<1x32xf32>
    %c0_14 = arith.constant 0 : index
    %c0_15 = arith.constant 0 : index
    %8 = vector.load %arg8[%c0_14, %c0_15] : memref<32x32xf32, #tpu.memory_space<vmem>>, vector<32x32xf32>
    %c0_16 = arith.constant 0 : index
    %c0_17 = arith.constant 0 : index
    %9 = vector.load %arg9[%c0_16, %c0_17] : memref<1x32xf32, #tpu.memory_space<vmem>>, vector<1x32xf32>
    %c0_18 = arith.constant 0 : index
    %c0_19 = arith.constant 0 : index
    %10 = vector.load %arg10[%c0_18, %c0_19] : memref<32x32xf32, #tpu.memory_space<vmem>>, vector<32x32xf32>
    %c0_20 = arith.constant 0 : index
    %c0_21 = arith.constant 0 : index
    %11 = vector.load %arg11[%c0_20, %c0_21] : memref<1x32xf32, #tpu.memory_space<vmem>>, vector<1x32xf32>
    %c0_22 = arith.constant 0 : index
    %c0_23 = arith.constant 0 : index
    %12 = vector.load %arg12[%c0_22, %c0_23] : memref<1x32xf32, #tpu.memory_space<vmem>>, vector<1x32xf32>
    %c0_24 = arith.constant 0 : index
    %c0_25 = arith.constant 0 : index
    %13 = vector.load %arg13[%c0_24, %c0_25] : memref<1x32xf32, #tpu.memory_space<vmem>>, vector<1x32xf32>
    %cst = arith.constant dense<0.000000e+00> : vector<9x96xf32>
    %14 = tpu.matmul %1, %2, %cst {dimension_numbers = #tpu.dot_dimension_numbers<[1], [0], [0], [1], [0, 0, 1, 1], [], []>} : vector<9x32xf32>, vector<32x96xf32>, vector<9x96xf32> -> vector<9x96xf32>
    %15 = vector.broadcast %3 : vector<1x96xf32> to vector<9x96xf32>
    %16 = arith.addf %14, %15 : vector<9x96xf32>
    %17 = vector.extract_strided_slice %16 {offsets = [0, 0], sizes = [9, 32], strides = [1, 1]} : vector<9x96xf32> to vector<9x32xf32>
    %18 = vector.extract_strided_slice %16 {offsets = [0, 32], sizes = [9, 32], strides = [1, 1]} : vector<9x96xf32> to vector<9x32xf32>
    %19 = vector.extract_strided_slice %16 {offsets = [0, 64], sizes = [9, 32], strides = [1, 1]} : vector<9x96xf32> to vector<9x32xf32>
    %cst_26 = arith.constant 0.176776692 : f32
    %20 = vector.broadcast %cst_26 : f32 to vector<9x32xf32>
    %21 = arith.mulf %17, %20 : vector<9x32xf32>
    %cst_27 = arith.constant dense<0.000000e+00> : vector<9x9xf32>
    %22 = tpu.matmul %21, %18, %cst_27 {dimension_numbers = #tpu.dot_dimension_numbers<[1], [1], [0], [0], [0, 0, 1, 0], [], []>} : vector<9x32xf32>, vector<9x32xf32>, vector<9x9xf32> -> vector<9x9xf32>
    %cst_28 = arith.constant dense<0xFF800000> : vector<9xf32>
    %23 = vector.multi_reduction <maximumf>, %22, %cst_28 [1] : vector<9x9xf32> to vector<9xf32>
    %24 = vector.shape_cast %23 : vector<9xf32> to vector<9x1xf32>
    %25 = vector.broadcast %24 : vector<9x1xf32> to vector<9x9xf32>
    %26 = arith.subf %22, %25 : vector<9x9xf32>
    %27 = math.exp %26 : vector<9x9xf32>
    %cst_29 = arith.constant dense<0.000000e+00> : vector<9xf32>
    %28 = vector.multi_reduction <add>, %27, %cst_29 [1] : vector<9x9xf32> to vector<9xf32>
    %29 = vector.shape_cast %28 : vector<9xf32> to vector<9x1xf32>
    %30 = vector.broadcast %29 : vector<9x1xf32> to vector<9x9xf32>
    %31 = arith.divf %27, %30 : vector<9x9xf32>
    %cst_30 = arith.constant dense<0.000000e+00> : vector<9x32xf32>
    %32 = tpu.matmul %31, %19, %cst_30 {dimension_numbers = #tpu.dot_dimension_numbers<[1], [0], [0], [1], [0, 0, 1, 1], [], []>} : vector<9x9xf32>, vector<9x32xf32>, vector<9x32xf32> -> vector<9x32xf32>
    %cst_31 = arith.constant dense<0.000000e+00> : vector<9x32xf32>
    %33 = tpu.matmul %32, %4, %cst_31 {dimension_numbers = #tpu.dot_dimension_numbers<[1], [0], [0], [1], [0, 0, 1, 1], [], []>} : vector<9x32xf32>, vector<32x32xf32>, vector<9x32xf32> -> vector<9x32xf32>
    %34 = vector.broadcast %5 : vector<1x32xf32> to vector<9x32xf32>
    %35 = arith.addf %33, %34 : vector<9x32xf32>
    %36 = arith.addf %1, %35 : vector<9x32xf32>
    %cst_32 = arith.constant dense<0.000000e+00> : vector<9xf32>
    %37 = vector.multi_reduction <add>, %36, %cst_32 [1] : vector<9x32xf32> to vector<9xf32>
    %38 = vector.shape_cast %37 : vector<9xf32> to vector<9x1xf32>
    %cst_33 = arith.constant 3.200000e+01 : f32
    %39 = vector.broadcast %cst_33 : f32 to vector<9x1xf32>
    %40 = arith.divf %38, %39 : vector<9x1xf32>
    %41 = vector.broadcast %40 : vector<9x1xf32> to vector<9x32xf32>
    %42 = arith.subf %36, %41 : vector<9x32xf32>
    %43 = arith.mulf %42, %42 : vector<9x32xf32>
    %cst_34 = arith.constant dense<0.000000e+00> : vector<9xf32>
    %44 = vector.multi_reduction <add>, %43, %cst_34 [1] : vector<9x32xf32> to vector<9xf32>
    %45 = vector.shape_cast %44 : vector<9xf32> to vector<9x1xf32>
    %cst_35 = arith.constant 3.200000e+01 : f32
    %46 = vector.broadcast %cst_35 : f32 to vector<9x1xf32>
    %47 = arith.divf %45, %46 : vector<9x1xf32>
    %cst_36 = arith.constant 9.99999974E-6 : f32
    %48 = vector.broadcast %cst_36 : f32 to vector<9x1xf32>
    %49 = arith.addf %47, %48 : vector<9x1xf32>
    %50 = math.rsqrt %49 : vector<9x1xf32>
    %51 = vector.broadcast %50 : vector<9x1xf32> to vector<9x32xf32>
    %52 = arith.mulf %42, %51 : vector<9x32xf32>
    %53 = vector.broadcast %6 : vector<1x32xf32> to vector<9x32xf32>
    %54 = arith.mulf %52, %53 : vector<9x32xf32>
    %55 = vector.broadcast %7 : vector<1x32xf32> to vector<9x32xf32>
    %56 = arith.addf %54, %55 : vector<9x32xf32>
    %cst_37 = arith.constant dense<0.000000e+00> : vector<9x32xf32>
    %57 = tpu.matmul %56, %8, %cst_37 {dimension_numbers = #tpu.dot_dimension_numbers<[1], [0], [0], [1], [0, 0, 1, 1], [], []>} : vector<9x32xf32>, vector<32x32xf32>, vector<9x32xf32> -> vector<9x32xf32>
    %58 = vector.broadcast %9 : vector<1x32xf32> to vector<9x32xf32>
    %59 = arith.addf %57, %58 : vector<9x32xf32>
    %cst_38 = arith.constant 0.000000e+00 : f32
    %60 = vector.broadcast %cst_38 : f32 to vector<9x32xf32>
    %61 = arith.maximumf %59, %60 : vector<9x32xf32>
    %cst_39 = arith.constant dense<0.000000e+00> : vector<9x32xf32>
    %62 = tpu.matmul %61, %10, %cst_39 {dimension_numbers = #tpu.dot_dimension_numbers<[1], [0], [0], [1], [0, 0, 1, 1], [], []>} : vector<9x32xf32>, vector<32x32xf32>, vector<9x32xf32> -> vector<9x32xf32>
    %63 = vector.broadcast %11 : vector<1x32xf32> to vector<9x32xf32>
    %64 = arith.addf %62, %63 : vector<9x32xf32>
    %65 = arith.addf %56, %64 : vector<9x32xf32>
    %cst_40 = arith.constant dense<0.000000e+00> : vector<9xf32>
    %66 = vector.multi_reduction <add>, %65, %cst_40 [1] : vector<9x32xf32> to vector<9xf32>
    %67 = vector.shape_cast %66 : vector<9xf32> to vector<9x1xf32>
    %cst_41 = arith.constant 3.200000e+01 : f32
    %68 = vector.broadcast %cst_41 : f32 to vector<9x1xf32>
    %69 = arith.divf %67, %68 : vector<9x1xf32>
    %70 = vector.broadcast %69 : vector<9x1xf32> to vector<9x32xf32>
    %71 = arith.subf %65, %70 : vector<9x32xf32>
    %72 = arith.mulf %71, %71 : vector<9x32xf32>
    %cst_42 = arith.constant dense<0.000000e+00> : vector<9xf32>
    %73 = vector.multi_reduction <add>, %72, %cst_42 [1] : vector<9x32xf32> to vector<9xf32>
    %74 = vector.shape_cast %73 : vector<9xf32> to vector<9x1xf32>
    %cst_43 = arith.constant 3.200000e+01 : f32
    %75 = vector.broadcast %cst_43 : f32 to vector<9x1xf32>
    %76 = arith.divf %74, %75 : vector<9x1xf32>
    %cst_44 = arith.constant 9.99999974E-6 : f32
    %77 = vector.broadcast %cst_44 : f32 to vector<9x1xf32>
    %78 = arith.addf %76, %77 : vector<9x1xf32>
    %79 = math.rsqrt %78 : vector<9x1xf32>
    %80 = vector.broadcast %79 : vector<9x1xf32> to vector<9x32xf32>
    %81 = arith.mulf %71, %80 : vector<9x32xf32>
    %82 = vector.broadcast %12 : vector<1x32xf32> to vector<9x32xf32>
    %83 = arith.mulf %81, %82 : vector<9x32xf32>
    %84 = vector.broadcast %13 : vector<1x32xf32> to vector<9x32xf32>
    %85 = arith.addf %83, %84 : vector<9x32xf32>
    %cst_45 = arith.constant dense<0.000000e+00> : vector<32xf32>
    %86 = vector.multi_reduction <add>, %85, %cst_45 [0] : vector<9x32xf32> to vector<32xf32>
    %87 = vector.shape_cast %86 : vector<32xf32> to vector<1x32xf32>
    %cst_46 = arith.constant 9.000000e+00 : f32
    %88 = vector.broadcast %cst_46 : f32 to vector<1x32xf32>
    %89 = arith.divf %87, %88 : vector<1x32xf32>
    %c0_47 = arith.constant 0 : index
    %c0_48 = arith.constant 0 : index
    %c0_49 = arith.constant 0 : index
    %90 = vector.load %arg14[%c0_47, %c0_48, %c0_49] : memref<1x1x32xf32, #tpu.memory_space<vmem>>, vector<1x1x32xf32>
    %91 = vector.shape_cast %90 : vector<1x1x32xf32> to vector<1x32xf32>
    %92 = vector.shape_cast %89 : vector<1x32xf32> to vector<1x1x32xf32>
    tpu.vector_store %arg14[%c0_47, %c0_48, %c0_49], %92 {strides = array<i32>} : memref<1x1x32xf32, #tpu.memory_space<vmem>>, vector<1x1x32xf32>,
    return
  }
  func.func @transform_0(%arg0: i32) -> (i32, i32, i32) {
    %c0_i32 = arith.constant 0 : i32
    %c0_i32_0 = arith.constant 0 : i32
    %c0_i32_1 = arith.constant 0 : i32
    return %arg0, %c0_i32, %c0_i32_0 : i32, i32, i32
  }
  func.func @transform_1(%arg0: i32) -> (i32, i32) {
    %c0_i32 = arith.constant 0 : i32
    %c0_i32_0 = arith.constant 0 : i32
    %c0_i32_1 = arith.constant 0 : i32
    return %c0_i32, %c0_i32_0 : i32, i32
  }
  func.func @transform_2(%arg0: i32) -> (i32, i32) {
    %c0_i32 = arith.constant 0 : i32
    %c0_i32_0 = arith.constant 0 : i32
    %c0_i32_1 = arith.constant 0 : i32
    return %c0_i32, %c0_i32_0 : i32, i32
  }
  func.func @transform_3(%arg0: i32) -> (i32, i32) {
    %c0_i32 = arith.constant 0 : i32
    %c0_i32_0 = arith.constant 0 : i32
    %c0_i32_1 = arith.constant 0 : i32
    return %c0_i32, %c0_i32_0 : i32, i32
  }
  func.func @transform_4(%arg0: i32) -> (i32, i32) {
    %c0_i32 = arith.constant 0 : i32
    %c0_i32_0 = arith.constant 0 : i32
    %c0_i32_1 = arith.constant 0 : i32
    return %c0_i32, %c0_i32_0 : i32, i32
  }
  func.func @transform_5(%arg0: i32) -> (i32, i32) {
    %c0_i32 = arith.constant 0 : i32
    %c0_i32_0 = arith.constant 0 : i32
    %c0_i32_1 = arith.constant 0 : i32
    return %c0_i32, %c0_i32_0 : i32, i32
  }
  func.func @transform_6(%arg0: i32) -> (i32, i32) {
    %c0_i32 = arith.constant 0 : i32
    %c0_i32_0 = arith.constant 0 : i32
    %c0_i32_1 = arith.constant 0 : i32
    return %c0_i32, %c0_i32_0 : i32, i32
  }
  func.func @transform_7(%arg0: i32) -> (i32, i32) {
    %c0_i32 = arith.constant 0 : i32
    %c0_i32_0 = arith.constant 0 : i32
    %c0_i32_1 = arith.constant 0 : i32
    return %c0_i32, %c0_i32_0 : i32, i32
  }
  func.func @transform_8(%arg0: i32) -> (i32, i32) {
    %c0_i32 = arith.constant 0 : i32
    %c0_i32_0 = arith.constant 0 : i32
    %c0_i32_1 = arith.constant 0 : i32
    return %c0_i32, %c0_i32_0 : i32, i32
  }
  func.func @transform_9(%arg0: i32) -> (i32, i32) {
    %c0_i32 = arith.constant 0 : i32
    %c0_i32_0 = arith.constant 0 : i32
    %c0_i32_1 = arith.constant 0 : i32
    return %c0_i32, %c0_i32_0 : i32, i32
  }
  func.func @transform_10(%arg0: i32) -> (i32, i32) {
    %c0_i32 = arith.constant 0 : i32
    %c0_i32_0 = arith.constant 0 : i32
    %c0_i32_1 = arith.constant 0 : i32
    return %c0_i32, %c0_i32_0 : i32, i32
  }
  func.func @transform_11(%arg0: i32) -> (i32, i32) {
    %c0_i32 = arith.constant 0 : i32
    %c0_i32_0 = arith.constant 0 : i32
    %c0_i32_1 = arith.constant 0 : i32
    return %c0_i32, %c0_i32_0 : i32, i32
  }
  func.func @transform_12(%arg0: i32) -> (i32, i32) {
    %c0_i32 = arith.constant 0 : i32
    %c0_i32_0 = arith.constant 0 : i32
    %c0_i32_1 = arith.constant 0 : i32
    return %c0_i32, %c0_i32_0 : i32, i32
  }
  func.func @transform_13(%arg0: i32) -> (i32, i32, i32) {
    %c0_i32 = arith.constant 0 : i32
    %c0_i32_0 = arith.constant 0 : i32
    %c0_i32_1 = arith.constant 0 : i32
    return %arg0, %c0_i32, %c0_i32_0 : i32, i32, i32
  }
}

</mosaic_0001>

<bundles_post_ra>
// kernel: tile.0
= control target key start
LH: loop header
LB: loop body
LE: loop exit
PB: predicated region body
PF: predicated region fallthrough
CT: control target
= control target key end

     0   :  { %s74_s8 = smov 127   ;;  %s75_s9 = smov 123   ;;  %vm7_vm0 = vcmask 7168   ;;  %s130_s0 = inlined_call_operand.vmem [shape: f32[2,9], index: 0, kind: input, shape index: {}]   ;;  %s131_s1 = inlined_call_operand.vmem [shape: f32[18,1], index: 1, kind: output, shape index: {}]  }
   0x1   :  { %v4_v0 = vld [vmem:[%s130_s0] sm:$0x3]  ;;  %s73_s0 = smov 125   ;;  %s76_s10 = smov 124  }
   0x2   :  { %5 = vst [vmem:[#allocation0] sm:$0x3] %v4_v0  ;;  %s77_s11 = smov 126   ;;  %s78_s12 = smov 122  }
   0x3   :  { %s79_s13 = smov 120   ;;  %s80_s14 = smov 121  }
   0x9   :  { %v21_v1 = vld [vmem:[#allocation0] sm:$0x3]  }
   0xa   :  { %v9_v2 = vld [vmem:[#allocation0] sm:$0x3]   ;;  %22 = vrot.lane.b32.xlu1 %v21_v1, %s73_s0 }
   0xb   :  { %10 = vrot.lane.b32.xlu0 %v9_v2, %s74_s8  ;;  %v33_v3 = vld [vmem:[#allocation0] sm:$0x3]  }
   0xc   :  { %34 = vrot.lane.b32.xlu2 %v33_v3, %s75_s9  ;;  %v27_v4 = vld [vmem:[#allocation0] sm:$0x3]  }
   0xd   :  { %v15_v5 = vld [vmem:[#allocation0] sm:$0x3]  }
   0xe   :  { %v39_v6 = vld [vmem:[#allocation0] sm:$0x3]  }
   0xf   :  { %v51_v7 = vld [vmem:[#allocation0] sm:$0x3]  }
  0x10   :  { %v45_v8 = vld [vmem:[#allocation0] sm:$0x3]  }
  0x11   :  { %v6_v10 = vld [vmem:[#allocation0] sm:$0x3]  }
  0x12   :  { %28 = vrot.lane.b32.xlu1 %v27_v4, %s76_s10  ;;  %8 = vst.msk [vmem:[%s131_s1] ss:$9 sm:$0x3] %vm7_vm0, %v6_v10  }
  0x13   :  { %16 = vrot.lane.b32.xlu0 %v15_v5, %s77_s11 }
  0x14   :  { %40 = vrot.lane.b32.xlu2 %v39_v6, %s78_s12 }
  0x1a   :  { %52 = vrot.lane.b32.xlu1 %v51_v7, %s79_s13 }
  0x1b   :  { %46 = vrot.lane.b32.xlu0 %v45_v8, %s80_s14 }
  0x66   :  { %v35_v9 = vpop.permute.xlu2 %34  }
  0x67   :  { %61 = vst.msk [vmem:[%s131_s1 + $0x5] ss:$9 sm:$0x3] %vm7_vm0, %v35_v9  }
  0x6e   :  { %v41_v11 = vpop.permute.xlu2 %40  }
  0x6f   :  { %62 = vst.msk [vmem:[%s131_s1 + $0x6] ss:$9 sm:$0x3] %vm7_vm0, %v41_v11  }
  0x7c   :  { %v23_v12 = vpop.permute.xlu1 %22  }
  0x7d   :  { %v11_v13 = vpop.permute.xlu0 %10   ;;  %59 = vst.msk [vmem:[%s131_s1 + $0x3] ss:$9 sm:$0x3] %vm7_vm0, %v23_v12  }
  0x7e   :  { %57 = vst.msk [vmem:[%s131_s1 + $0x1] ss:$9 sm:$0x3] %vm7_vm0, %v11_v13  }
  0x84   :  { %v29_v14 = vpop.permute.xlu1 %28  }
  0x85   :  { %v17_v15 = vpop.permute.xlu0 %16   ;;  %60 = vst.msk [vmem:[%s131_s1 + $0x4] ss:$9 sm:$0x3] %vm7_vm0, %v29_v14  }
  0x86   :  { %58 = vst.msk [vmem:[%s131_s1 + $0x2] ss:$9 sm:$0x3] %vm7_vm0, %v17_v15  }
  0x8c   :  { %v53_v16 = vpop.permute.xlu1 %52  }
  0x8d   :  { %v47_v17 = vpop.permute.xlu0 %46   ;;  %64 = vst.msk [vmem:[%s131_s1 + $0x8] ss:$9 sm:$0x3] %vm7_vm0, %v53_v16  }
  0x8e   :  { %63 = vst.msk [vmem:[%s131_s1 + $0x7] ss:$9 sm:$0x3] %vm7_vm0, %v47_v17  }

// kernel: tile.9
= control target key start
LH: loop header
LB: loop body
LE: loop exit
PB: predicated region body
PF: predicated region fallthrough
CT: control target
= control target key end

     0   :  { %s22_s0 = inlined_call_operand.vmem [shape: f32[9], index: 0, kind: input, shape index: {}]   ;;  %s23_s1 = inlined_call_operand.vmem [shape: f32[2,9], index: 1, kind: output, shape index: {}]  }
   0x1   :  { %v4_v0 = vld [vmem:[%s22_s0] ss:$0 sm:$0xff] }
   0x2   :  { %5 = vst [vmem:[%s23_s1] sm:$0x3] %v4_v0 }

// kernel: aggregate_transformer_forward.5
= control target key start
LH: loop header
LB: loop body
LE: loop exit
PB: predicated region body
PF: predicated region fallthrough
CT: control target
= control target key end

     0   :  { %v176_v3 = vmov 0   ;;  %vm45_vm0 = vcmask 130048   ;;  %vm128_vm1 = vcmask 261120   ;;  %vm131_vm2 = vcmask 254976   ;;  %s298_s1 = inlined_call_operand.vmem [shape: f32[144,32], index: 1, kind: input, shape index: {}]   ;;  %s299_s0 = inlined_call_operand.vmem [shape: f32[18,144], index: 0, kind: input, shape index: {}]   ;;  %s300_s3 = inlined_call_operand.vmem [shape: f32[18,1], index: 3, kind: input, shape index: {}]   ;;  %s301_s2 = inlined_call_operand.vmem [shape: f32[1,32], index: 2, kind: input, shape index: {}]   ;;  %s302_s4 = inlined_call_operand.vmem [shape: f32[18,32], index: 4, kind: output, shape index: {}]  }
   0x1   :  { %v38_v0 = vld [vmem:[%s298_s1 + $0x78] sm:$0xff]  ;;  %v37_v1 = vld [vmem:[%s298_s1 + $0x70] sm:$0xff]  ;;  %v36_v2 = vld [vmem:[%s298_s1 + $0x68] sm:$0xff]  ;;  %173 = vset.pattern.permute.xlu0 %v176_v3  ;;  %174 = vset.pattern.permute.xlu1 %v176_v3 }
   0x2   :  { %55 = vmatpush.msra.mxu0 %v38_v0  ;;  %140 = vmatpush.msra.mxu2 %v38_v0  ;;  %v40_v4 = vld [vmem:[%s298_s1 + $0x88] sm:$0xff]  ;;  %v35_v5 = vld [vmem:[%s298_s1 + $0x60] sm:$0xff]  ;;  %v34_v8 = vld [vmem:[%s298_s1 + $0x58] sm:$0xff] }
   0x3   :  { %141 = vmatpush.msra.mxu3 %v38_v0  ;;  %95 = vmatpush.msra.mxu1 %v40_v4  ;;  %v39_v6 = vld [vmem:[%s298_s1 + $0x80] sm:$0xff]  ;;  %v18_v7 = vld [vmem:[%s299_s0 + $0x8] sm:$0xff]  ;;  %v33_v10 = vld [vmem:[%s298_s1 + $0x50] sm:$0xff] }
   0x4   :  { %56 = vmatpush.msra.mxu0 %v37_v1  ;;  %142 = vmatpush.msra.mxu2 %v37_v1  ;;  %v107_v9 = vld [vmem:[%s300_s3] sm:$0xff]  ;;  %v32_v11 = vld [vmem:[%s298_s1 + $0x48] sm:$0xff]  ;;  %v109_v12 = vld [vmem:[%s300_s3 + $0x10] sm:$0x3] }
   0x5   :  { %143 = vmatpush.msra.mxu3 %v37_v1  ;;  %96 = vmatpush.msra.mxu1 %v39_v6  ;;  %v31_v13 = vld [vmem:[%s298_s1 + $0x40] sm:$0xff]  ;;  %v20_v14 = vld [vmem:[%s299_s0 + $0x18] sm:$0xff]  ;;  %v108_v16 = vld [vmem:[%s300_s3 + $0x8] sm:$0xff] }
   0x6   :  { %57 = vmatpush.msra.mxu0 %v36_v2  ;;  %144 = vmatpush.msra.mxu2 %v36_v2  ;;  %v30_v15 = vld [vmem:[%s298_s1 + $0x38] sm:$0xff]  ;;  %v29_v17 = vld [vmem:[%s298_s1 + $0x30] sm:$0xff]  ;;  %v28_v18 = vld [vmem:[%s298_s1 + $0x28] sm:$0xff] }
   0x7   :  { %145 = vmatpush.msra.mxu3 %v36_v2  ;;  %137 = vmatmul.msk.f32.vlgmr.msra.gmra.mxu1 %vm45_vm0, %v18_v7  ;;  %v27_v19 = vld [vmem:[%s298_s1 + $0x20] sm:$0xff]  ;;  %v22_v20 = vld [vmem:[%s299_s0 + $0x28] sm:$0x3]  ;;  %v26_v21 = vld [vmem:[%s298_s1 + $0x18] sm:$0xff] }
   0x8   :  { %58 = vmatpush.msra.mxu0 %v35_v5  ;;  %146 = vmatpush.msra.mxu2 %v35_v5  ;;  %v25_v22 = vld [vmem:[%s298_s1 + $0x10] sm:$0xff]  ;;  %v24_v23 = vld [vmem:[%s298_s1 + $0x8] sm:$0xff]  ;;  %v23_v24 = vld [vmem:[%s298_s1] sm:$0xff] }
   0x9   :  { %147 = vmatpush.msra.mxu3 %v35_v5  ;;  %112 = vperm.xlu0 %173, %v107_v9   ;;  %v17_v25 = vld [vmem:[%s299_s0] sm:$0xff]  ;;  %v19_v26 = vld [vmem:[%s299_s0 + $0x10] sm:$0xff] }
   0xa   :  { %59 = vmatpush.msra.mxu0 %v34_v8  ;;  %148 = vmatpush.msra.mxu2 %v34_v8  ;;  %v21_v27 = vld [vmem:[%s299_s0 + $0x20] sm:$0x3] }
   0xb   :  { %149 = vmatpush.msra.mxu3 %v34_v8  ;;  %122 = vperm.xlu1 %174, %v109_v12   ;;  %v175_v30 = vld [vmem:[%s301_s2] ss:$0 sm:$0xff] }
   0xc   :  { %60 = vmatpush.msra.mxu0 %v33_v10  ;;  %150 = vmatpush.msra.mxu2 %v33_v10 }
   0xd   :  { %151 = vmatpush.msra.mxu3 %v33_v10 }
   0xe   :  { %61 = vmatpush.msra.mxu0 %v32_v11  ;;  %152 = vmatpush.msra.mxu2 %v32_v11 }
   0xf   :  { %153 = vmatpush.msra.mxu3 %v32_v11  ;;  %138 = vmatmul.msk.f32.gmra.mxu1 %vm45_vm0, %v20_v14 }
  0x10   :  { %62 = vmatpush.msra.mxu0 %v31_v13  ;;  %154 = vmatpush.msra.mxu2 %v31_v13 }
  0x11   :  { %155 = vmatpush.msra.mxu3 %v31_v13  ;;  %117 = vperm.xlu0 %173, %v108_v16  }
  0x12   :  { %63 = vmatpush.msra.mxu0 %v30_v15  ;;  %156 = vmatpush.msra.mxu2 %v30_v15 }
  0x13   :  { %157 = vmatpush.msra.mxu3 %v30_v15 }
  0x14   :  { %64 = vmatpush.msra.mxu0 %v29_v17  ;;  %158 = vmatpush.msra.mxu2 %v29_v17 }
  0x15   :  { %159 = vmatpush.msra.mxu3 %v29_v17 }
  0x16   :  { %65 = vmatpush.msra.mxu0 %v28_v18  ;;  %160 = vmatpush.msra.mxu2 %v28_v18 }
  0x17   :  { %161 = vmatpush.msra.mxu3 %v28_v18  ;;  %139 = vmatmul.msk.f32.gmra.mxu1 %vm45_vm0, %v22_v20 }
  0x18   :  { %66 = vmatpush.msra.mxu0 %v27_v19  ;;  %162 = vmatpush.msra.mxu2 %v27_v19 }
  0x19   :  { %163 = vmatpush.msra.mxu3 %v27_v19 }
  0x1a   :  { %67 = vmatpush.msra.mxu0 %v26_v21  ;;  %164 = vmatpush.msra.mxu2 %v26_v21 }
  0x1b   :  { %165 = vmatpush.msra.mxu3 %v26_v21 }
  0x1c   :  { %68 = vmatpush.msra.mxu0 %v25_v22  ;;  %166 = vmatpush.msra.mxu2 %v25_v22 }
  0x1d   :  { %167 = vmatpush.msra.mxu3 %v25_v22 }
  0x1e   :  { %69 = vmatpush.msra.mxu0 %v24_v23  ;;  %168 = vmatpush.msra.mxu2 %v24_v23 }
  0x1f   :  { %169 = vmatpush.msra.mxu3 %v24_v23 }
  0x20   :  { %70 = vmatpush.msra.mxu0 %v23_v24  ;;  %170 = vmatpush.msra.mxu2 %v23_v24 }
  0x21   :  { %171 = vmatpush.msra.mxu3 %v23_v24  ;;  %71 = vmatmul.f32.vlgmr.msra.gmra.mxu0 %v17_v25 }
  0x22   :  { %74 = vmatmul.f32.vlgmr.msra.gmra.mxu2 %v19_v26  ;;  %77 = vmatmul.f32.vlgmr.msra.gmra.mxu3 %v21_v27 }
  0x7b   :  { %v113_v32 = vpop.permute.xlu0 %112 }
  0x7d   :  { %v123_v41 = vpop.permute.xlu1 %122 }
  0x83   :  { %v118_v44 = vpop.permute.xlu0 %117 }
  0x84   :  { %v98_v28 = vpop.f32.mrf.mxu1 }
  0x8c   :  { %v101_v29 = vpop.f32.mrf.mxu1 }
  0x94   :  { %v104_v36 = vpop.f32.mrf.mxu1 }
  0x9e   :  { %v72_v31 = vpop.f32.mrf.mxu0 }
  0x9f   :  { %v73_v33 = vadd.f32 %v175_v30, %v72_v31 }
  0xa1   :  { %v99_v34 = vadd.f32 %v98_v28, %v73_v33 }
  0xa3   :  { %v125_v35 = vadd.f32 %v113_v32, %v99_v34 }
  0xa5   :  { %v75_v37 = vpop.f32.mrf.mxu2  ;;  %v78_v38 = vpop.f32.mrf.mxu3  ;;  %129 = vst.msk [vmem:[%s302_s4] sm:$0xff] %vm128_vm1, %v125_v35 }
  0xa6   :  { %v76_v39 = vadd.f32 %v175_v30, %v75_v37  ;;  %v79_v40 = vadd.f32 %v175_v30, %v78_v38 }
  0xa8   :  { %v102_v42 = vadd.f32 %v101_v29, %v76_v39  ;;  %v105_v43 = vadd.f32 %v104_v36, %v79_v40 }
  0xaa   :  { %v126_v45 = vadd.f32 %v118_v44, %v102_v42  ;;  %v127_v46 = vadd.f32 %v123_v41, %v105_v43 }
  0xac   :  { %130 = vst.msk [vmem:[%s302_s4 + $0x8] sm:$0xff] %vm128_vm1, %v126_v45 }
  0xad   :  { %132 = vst.msk [vmem:[%s302_s4 + $0x10] sm:$0x3] %vm131_vm2, %v127_v46 }

// kernel: aggregate_transformer_forward.6
= control target key start
LH: loop header
LB: loop body
LE: loop exit
PB: predicated region body
PF: predicated region fallthrough
CT: control target
= control target key end

     0   :  { %s1060_s25 = smov 0   ;;  %s1200_s0 = inlined_call_operand.vmem [shape: f32[2,9,32], index: 0, kind: input, shape index: {}]   ;;  %s1201_s1 = inlined_call_operand.vmem [shape: f32[32,96], index: 1, kind: input, shape index: {}]   ;;  %s1202_s2 = inlined_call_operand.vmem [shape: f32[1,96], index: 2, kind: input, shape index: {}]   ;;  %s1203_s3 = inlined_call_operand.vmem [shape: f32[32,32], index: 3, kind: input, shape index: {}]   ;;  %s1204_s4 = inlined_call_operand.vmem [shape: f32[1,32], index: 4, kind: input, shape index: {}]   ;;  %s1205_s5 = inlined_call_operand.vmem [shape: f32[1,32], index: 5, kind: input, shape index: {}]   ;;  %s1206_s6 = inlined_call_operand.vmem [shape: f32[1,32], index: 6, kind: input, shape index: {}]   ;;  %s1207_s7 = inlined_call_operand.vmem [shape: f32[32,32], index: 7, kind: input, shape index: {}]   ;;  %s1208_s8 = inlined_call_operand.vmem [shape: f32[1,32], index: 8, kind: input, shape index: {}]   ;;  %s1209_s9 = inlined_call_operand.vmem [shape: f32[32,32], index: 9, kind: input, shape index: {}]   ;;  %s1210_s10 = inlined_call_operand.vmem [shape: f32[1,32], index: 10, kind: input, shape index: {}]   ;;  %s1211_s11 = inlined_call_operand.vmem [shape: f32[1,32], index: 11, kind: input, shape index: {}]   ;;  %s1212_s12 = inlined_call_operand.vmem [shape: f32[1,32], index: 12, kind: input, shape index: {}]   ;;  %s1213_s13 = inlined_call_operand.vmem [shape: f32[2,1,32], index: 13, kind: output, shape index: {}]  }
   0x1 LB: > { %s907_s26 = sadd.s32 4294967295, %s984_s25   ;;  %p911_p0 = scmp.ge.s32.totalorder %s984_s25, 1  ;;  %s984_s25 = sphi %s1060_s25, %s23_s25  }
   0x2   : > { %p387_p1 = scmp.lt.s32.totalorder %s984_s25, 3 }
   0x4   : > { %p388_p2 = pnand %p911_p0, %p387_p1 }
   0x5   : > { %p429_p3 = scmp.lt.s32.totalorder (!%p388_p2), %s907_s26, 1  ;;  %s986_s24 = smov (!%p388_p2), 96  }
   0x6   : > { %391 = sbr.rel (%p388_p2) target bundleno = 1759 (0x6df), region = 72  ;;  %s987_s27 = smov (!%p388_p2), 64  }
   0xb   : > { %v442_v0 = vld [vmem:[%s1201_s1 + $0x18] sm:$0xff]  ;;  %v441_v1 = vld [vmem:[%s1201_s1 + $0x10] sm:$0xff]  ;;  %v440_v2 = vld [vmem:[%s1201_s1 + $0x8] sm:$0xff]  ;;  %s1215_s26 = smov (!%p429_p3, %s907_s26), 1  ;;  %vm466_vm0 = vcmask 261120   ;;  %vm598_vm1 = vcmask 1040384  }
   0xc   : > { %932 = vmatpush.msra.mxu1 %v442_v0  ;;  %485 = vmatpush.msra.mxu0 %v442_v0  ;;  %v439_v3 = vld [vmem:[%s1201_s1] sm:$0xff]  ;;  %s931_s18 = sshll.u32 %s1215_s26, 4  ;;  %vm537_vm2 = vcmask 72704   ;;  %vm541_vm3 = vcmask 65536   ;;  %v447_v31 = vld [vmem:[%s1203_s3 + $0x18] sm:$0xff]  ;;  %v446_v32 = vld [vmem:[%s1203_s3 + $0x10] sm:$0xff] }
   0xd   : > { %s433_s21 = scalar_lea.vmem %s1200_s0, %s931_s18  ;;  %v950_v6 = vld [vmem:[%s1202_s2] ss:$0 sm:$0xff]  ;;  %v445_v33 = vld [vmem:[%s1203_s3 + $0x8] sm:$0xff]  ;;  %vm661_vm12 = vcmask 253952  }
   0xe   : > { %933 = vmatpush.msra.mxu1 %v441_v1  ;;  %486 = vmatpush.msra.mxu0 %v441_v1  ;;  %v1086_v4 = vld [vmem:[%s433_s21 + $0x8] sm:$0x1]  ;;  %v1088_v5 = vld [vmem:[%s433_s21] sm:$0xff]  ;;  %s436_s21 = scalar_lea.vmem %s1213_s13, %s1215_s26 }
   0xf   : > { %v444_v58 = vld [vmem:[%s1203_s3] sm:$0xff] }
  0x10   : > { %934 = vmatpush.msra.mxu1 %v440_v2  ;;  %487 = vmatpush.msra.mxu0 %v440_v2  ;;  %v951_v61 = vld [vmem:[%s1204_s4] ss:$0 sm:$0xff] }
  0x12   : > { %935 = vmatpush.msra.mxu1 %v439_v3  ;;  %488 = vmatpush.msra.mxu0 %v439_v3 }
  0x13   : > { %915 = vmatmul.msk.f32.vlgmr.msra.gmra.mxu1 %vm466_vm0, %v1086_v4  ;;  %914 = vmatmul.msk.f32.vlgmr.msra.gmra.mxu0 %vm466_vm0, %v1088_v5 }
  0x90   : > { %v493_v7 = vpop.f32.mrf.mxu1  ;;  %v490_v9 = vpop.f32.mrf.mxu0 }
  0x91   : > { %v494_v8 = vadd.f32 %v950_v6, %v493_v7  ;;  %v491_v10 = vadd.f32 %v950_v6, %v490_v9 }
  0x93   : > { %502 = vrot.lane.b32.xlu0 %v494_v8, %s986_s24  ;;  %v496_v13 = vmul.f32 0.17677669, %v491_v10  ;;  %v497_v15 = vmul.f32 0.17677669, %v494_v8 }
  0x9b   : > { %500 = vrot.lane.b32.xlu0 %v491_v10, %s986_s24 }
  0xa3   : > { %589 = vrot.lane.b32.xlu0 %v494_v8, %s987_s27  ;;  %v988_v8 = vmov 32.0  }
 0x105   : > { %v503_v11 = vpop.permute.xlu0 %502 }
 0x106   : > { %916 = vmatpush.xpose.msk.msrb.mxu1 %vm466_vm0, %v503_v11 }
 0x10d   : > { %v501_v12 = vpop.permute.xlu0 %500 }
 0x10e   : > { %917 = vmatpush.xpose.msk.msrb.mxu1 %vm466_vm0, %v501_v12 }
 0x111   : > { %918 = vmatmul.msk.f32.vlgmr.msrb.gmra.mxu1 %vm466_vm0, %v496_v13 }
 0x115   : > { %v590_v14 = vpop.permute.xlu0 %589 }
 0x116   : > { %920 = vmatpush.msk.msra.mxu2 %vm598_vm1, %v590_v14  ;;  %936 = vmatpush.msk.msra.mxu3 %vm598_vm1, %v590_v14 }
 0x119   : > { %919 = vmatmul.msk.f32.gmra.mxu1 %vm466_vm0, %v497_v15 }
 0x18e   : > { %v531_v16 = vpop.f32.mrf.mxu1 }
 0x18f   : > { %v538_v17 = vsel %vm537_vm2, %v531_v16, -inf }
 0x190   : > { %539 = vmax.xlane.f32.xlu1 %v538_v17 }
 0x196   : > { %v534_v18 = vpop.f32.mrf.mxu1 }
 0x197   : > { %v542_v19 = vsel %vm541_vm3, %v534_v18, -inf }
 0x198   : > { %543 = vmax.xlane.f32.xlu1 %v542_v19 }
 0x1b1   : > { %587 = vrot.lane.b32.xlu1 %v491_v10, %s987_s27 }
 0x203   : > { %v540_v20 = vpop.xlane.xlu1 %539 }
 0x204   : > { %v545_v21 = vsub.f32 %v531_v16, %v540_v20 }
 0x206   : > { %v547_v22 = vmul.f32 1.442695, %v545_v21 }
 0x208   : > { %958 = vpow2.f32 %v547_v22 }
 0x20b   : > { %v544_v23 = vpop.xlane.xlu1 %543 }
 0x20c   : > { %v546_v24 = vsub.f32 %v534_v18, %v544_v23  ;;  %v454_v23 = vld [vmem:[%s1207_s7 + $0x18] sm:$0xff] }
 0x20e   : > { %v959_v25 = vpop.eup %958  ;;  %v549_v26 = vmul.f32 1.442695, %v546_v24  ;;  %v453_v24 = vld [vmem:[%s1207_s7 + $0x10] sm:$0xff] }
 0x20f   : > { %v551_v27 = vsel %vm537_vm2, %v959_v25, 0.0 }
 0x210   : > { %960 = vpow2.f32 %v549_v26  ;;  %552 = vadd.xlane.f32.xlu2 %v551_v27  ;;  %v451_v26 = vld [vmem:[%s1207_s7] sm:$0xff] }
 0x216   : > { %v961_v28 = vpop.eup %960 }
 0x217   : > { %v554_v29 = vsel %vm541_vm3, %v961_v28, 0.0 }
 0x218   : > { %555 = vadd.xlane.f32.xlu2 %v554_v29 }
 0x223   : > { %v588_v30 = vpop.permute.xlu1 %587 }
 0x224   : > { %616 = vmatpush.msra.mxu2 %v588_v30  ;;  %937 = vmatpush.msra.mxu3 %v588_v30  ;;  %v459_v30 = vld [vmem:[%s1209_s9 + $0x18] sm:$0xff] }
 0x225   : > { %775 = vmatpush.msrb.mxu0 %v459_v30 }
 0x226   : > { %645 = vmatpush.msrb.mxu3 %v447_v31  ;;  %741 = vmatpush.msrb.mxu2 %v454_v23 }
 0x228   : > { %646 = vmatpush.msrb.mxu3 %v446_v32  ;;  %742 = vmatpush.msrb.mxu2 %v453_v24 }
 0x22a   : > { %647 = vmatpush.msrb.mxu3 %v445_v33 }
 0x22c   : > { %648 = vmatpush.msrb.mxu3 %v444_v58  ;;  %v456_v58 = vld [vmem:[%s1209_s9] sm:$0xff] }
 0x283   : > { %v553_v34 = vpop.xlane.xlu2 %552 }
 0x284   : > { %962 = vrcp.f32 %v553_v34  ;;  %v568_v39 = vand.u32 2147483648, %v553_v34  ;;  %v566_v41 = vand.u32 2147483647, %v553_v34  ;;  %vm562_vm5 = vweird.f32 %v553_v34 }
 0x286   : > { %v569_v44 = vor.u32 1.1754944e-38, %v568_v39  ;;  %vm567_vm7 = vcmp.eq.f32.partialorder %v566_v41, 8.507059e+37 }
 0x28a   : > { %v963_v35 = vpop.eup %962 }
 0x28b   : > { %v558_v36 = vmul.f32 %v963_v35, %v553_v34  ;;  %v556_v37 = vpop.xlane.xlu2 %555  ;;  %vm563_vm4 = vweird.f32 %v963_v35 }
 0x28c   : > { %964 = vrcp.f32 %v556_v37  ;;  %vm564_vm6 = vmor %vm562_vm5, %vm563_vm4  ;;  %v583_v50 = vand.u32 2147483648, %v556_v37  ;;  %v581_v52 = vand.u32 2147483647, %v556_v37  ;;  %vm577_vm9 = vweird.f32 %v556_v37 }
 0x28d   : > { %v559_v38 = vsub.f32 1.0, %v558_v36  ;;  %966 = vrcp.f32 %v988_v8 }
 0x28e   : > { %v584_v54 = vor.u32 1.1754944e-38, %v583_v50  ;;  %vm582_vm11 = vcmp.eq.f32.partialorder %v581_v52, 8.507059e+37 }
 0x28f   : > { %v560_v40 = vmul.f32 %v963_v35, %v559_v38 }
 0x291   : > { %v561_v42 = vadd.f32 %v963_v35, %v560_v40 }
 0x292   : > { %v965_v43 = vpop.eup %964 }
 0x293   : > { %v573_v45 = vmul.f32 %v965_v43, %v556_v37  ;;  %v565_v46 = vsel %vm564_vm6, %v963_v35, %v561_v42  ;;  %vm578_vm8 = vweird.f32 %v965_v43  ;;  %v967_v9 = vpop.eup %966  ;;  %v952_v42 = vld [vmem:[%s1205_s5] ss:$0 sm:$0xff] }
 0x294   : > { %v570_v47 = vsel %vm567_vm7, %v569_v44, %v565_v46  ;;  %vm579_vm10 = vmor %vm577_vm9, %vm578_vm8  ;;  %v666_v10 = vmul.f32 32.0, %v967_v9  ;;  %vm670_vm13 = vweird.f32 %v967_v9  ;;  %v953_v46 = vld [vmem:[%s1206_s6] ss:$0 sm:$0xff] }
 0x295   : > { %v574_v48 = vsub.f32 1.0, %v573_v45  ;;  %v571_v49 = vmul.f32 %v959_v25, %v570_v47  ;;  %v452_v25 = vld [vmem:[%s1207_s7 + $0x8] sm:$0xff] }
 0x296   : > { %v667_v11 = vsub.f32 1.0, %v666_v10  ;;  %743 = vmatpush.msrb.mxu2 %v452_v25 }
 0x297   : > { %v575_v51 = vmul.f32 %v965_v43, %v574_v48  ;;  %921 = vmatmul.msk.f32.vlgmr.msra.gmra.mxu2 %vm537_vm2, %v571_v49 }
 0x298   : > { %v668_v12 = vmul.f32 %v967_v9, %v667_v11  ;;  %744 = vmatpush.msrb.mxu2 %v451_v26 }
 0x299   : > { %v576_v53 = vadd.f32 %v965_v43, %v575_v51 }
 0x29a   : > { %v669_v13 = vadd.f32 %v967_v9, %v668_v12 }
 0x29b   : > { %v580_v55 = vsel %vm579_vm10, %v965_v43, %v576_v53 }
 0x29c   : > { %v585_v56 = vsel %vm582_vm11, %v584_v54, %v580_v55 }
 0x29d   : > { %v586_v57 = vmul.f32 %v961_v28, %v585_v56  ;;  %v458_v56 = vld [vmem:[%s1209_s9 + $0x10] sm:$0xff] }
 0x29e   : > { %776 = vmatpush.msrb.mxu0 %v458_v56 }
 0x29f   : > { %922 = vmatmul.msk.f32.vlgmr.msra.gmra.mxu3 %vm537_vm2, %v586_v57  ;;  %v457_v57 = vld [vmem:[%s1209_s9 + $0x8] sm:$0xff] }
 0x2a0   : > { %777 = vmatpush.msrb.mxu0 %v457_v57 }
 0x2a2   : > { %778 = vmatpush.msrb.mxu0 %v456_v58 }
 0x31a   : > { %v618_v59 = vpop.f32.mrf.mxu2 }
 0x31b   : > { %923 = vmatmul.msk.f32.vlgmr.msrb.gmra.mxu3 %vm466_vm0, %v618_v59  ;;  %v954_v59 = vld [vmem:[%s1208_s8] ss:$0 sm:$0xff] }
 0x322   : > { %v621_v60 = vpop.f32.mrf.mxu3 }
 0x323   : > { %924 = vmatmul.msk.f32.gmra.mxu3 %vm466_vm0, %v621_v60 }
 0x39e   : > { %v650_v62 = vpop.f32.mrf.mxu3 }
 0x39f   : > { %v651_v63 = vadd.f32 %v951_v61, %v650_v62 }
 0x3a1   : > { %v656_v0 = vadd.f32 %v651_v63, %v1088_v5  ;;  %v1128_v5 = vsel %vm670_vm13, %v967_v9, %v669_v13 }
 0x3a3   : > { %v658_v1 = vsel %vm466_vm0, %v656_v0, 0.0 }
 0x3a4   : > { %659 = vadd.xlane.f32.xlu2 %v658_v1 }
 0x3a6   : > { %v653_v2 = vpop.f32.mrf.mxu3 }
 0x3a7   : > { %v654_v3 = vadd.f32 %v951_v61, %v653_v2  ;;  %v955_v2 = vld [vmem:[%s1210_s10] ss:$0 sm:$0xff] }
 0x3a9   : > { %v657_v6 = vadd.f32 %v654_v3, %v1086_v4 }
 0x3ab   : > { %v662_v7 = vsel %vm661_vm12, %v657_v6, 0.0 }
 0x3ac   : > { %663 = vadd.xlane.f32.xlu0 %v662_v7 }
 0x417   : > { %v660_v14 = vpop.xlane.xlu2 %659 }
 0x418   : > { %v672_v15 = vmul.f32 %v1128_v5, %v660_v14 }
 0x41a   : > { %v674_v16 = vsub.f32 %v656_v0, %v672_v15 }
 0x41c   : > { %v676_v17 = vmul.f32 %v674_v16, %v674_v16 }
 0x41e   : > { %v678_v4 = vsel %vm466_vm0, %v676_v17, 0.0 }
 0x41f   : > { %v664_v18 = vpop.xlane.xlu0 %663  ;;  %679 = vadd.xlane.f32.xlu2 %v678_v4 }
 0x420   : > { %v673_v19 = vmul.f32 %v1128_v5, %v664_v18 }
 0x422   : > { %v675_v20 = vsub.f32 %v657_v6, %v673_v19 }
 0x424   : > { %v677_v21 = vmul.f32 %v675_v20, %v675_v20 }
 0x426   : > { %v681_v22 = vsel %vm661_vm12, %v677_v21, 0.0 }
 0x427   : > { %682 = vadd.xlane.f32.xlu2 %v681_v22 }
 0x492   : > { %v680_v27 = vpop.xlane.xlu2 %679 }
 0x493   : > { %v684_v28 = vmul.f32 %v680_v27, %v1128_v5 }
 0x495   : > { %v686_v29 = vadd.f32 1e-05, %v684_v28 }
 0x497   : > { %968 = vrsqrt.f32 %v686_v29  ;;  %vm694_vm15 = vweird.f32 %v686_v29 }
 0x49a   : > { %v683_v31 = vpop.xlane.xlu2 %682 }
 0x49b   : > { %v685_v32 = vmul.f32 %v683_v31, %v1128_v5 }
 0x49d   : > { %v969_v33 = vpop.eup %968  ;;  %v687_v34 = vadd.f32 1e-05, %v685_v32 }
 0x49e   : > { %v689_v35 = vmul.f32 %v969_v33, %v686_v29  ;;  %vm695_vm14 = vweird.f32 %v969_v33 }
 0x49f   : > { %970 = vrsqrt.f32 %v687_v34  ;;  %vm696_vm1 = vmor %vm694_vm15, %vm695_vm14  ;;  %vm704_vm3 = vweird.f32 %v687_v34 }
 0x4a0   : > { %v690_v36 = vmul.f32 %v969_v33, %v689_v35 }
 0x4a2   : > { %v691_v37 = vmul.f32 0.5, %v690_v36 }
 0x4a4   : > { %v692_v38 = vsub.f32 1.5, %v691_v37 }
 0x4a5   : > { %v971_v39 = vpop.eup %970 }
 0x4a6   : > { %v693_v40 = vmul.f32 %v969_v33, %v692_v38  ;;  %v699_v41 = vmul.f32 %v971_v39, %v687_v34  ;;  %vm705_vm2 = vweird.f32 %v971_v39  ;;  %v989_v38 = vmov 9.0  }
 0x4a7   : > { %vm706_vm4 = vmor %vm704_vm3, %vm705_vm2 }
 0x4a8   : > { %v697_v43 = vsel %vm696_vm1, %v969_v33, %v693_v40  ;;  %v700_v44 = vmul.f32 %v971_v39, %v699_v41 }
 0x4a9   : > { %v708_v45 = vmul.f32 %v697_v43, %v674_v16  ;;  %v957_v43 = vld [vmem:[%s1212_s12] ss:$0 sm:$0xff] }
 0x4aa   : > { %v701_v47 = vmul.f32 0.5, %v700_v44 }
 0x4ab   : > { %v713_v48 = vmul.f32 %v952_v42, %v708_v45 }
 0x4ac   : > { %v702_v49 = vsub.f32 1.5, %v701_v47 }
 0x4ad   : > { %v718_v50 = vadd.f32 %v953_v46, %v713_v48 }
 0x4ae   : > { %v703_v51 = vmul.f32 %v971_v39, %v702_v49 }
 0x4af   : > { %925 = vmatmul.msk.f32.vlgmr.msrb.gmra.mxu2 %vm466_vm0, %v718_v50 }
 0x4b0   : > { %v707_v52 = vsel %vm706_vm4, %v971_v39, %v703_v51 }
 0x4b1   : > { %v709_v53 = vmul.f32 %v707_v52, %v675_v20 }
 0x4b3   : > { %v714_v54 = vmul.f32 %v952_v42, %v709_v53 }
 0x4b5   : > { %v719_v55 = vadd.f32 %v953_v46, %v714_v54 }
 0x4b7   : > { %926 = vmatmul.msk.f32.gmra.mxu2 %vm466_vm0, %v719_v55 }
 0x532   : > { %v746_v60 = vpop.f32.mrf.mxu2 }
 0x533   : > { %v747_v61 = vadd.f32 %v954_v59, %v746_v60 }
 0x535   : > { %v752_v62 = vmax.f32 %v747_v61, 0.0 }
 0x537   : > { %927 = vmatmul.msk.f32.vlgmr.msrb.gmra.mxu0 %vm466_vm0, %v752_v62 }
 0x53a   : > { %v749_v63 = vpop.f32.mrf.mxu2 }
 0x53b   : > { %v750_v0 = vadd.f32 %v954_v59, %v749_v63 }
 0x53d   : > { %v753_v1 = vmax.f32 %v750_v0, 0.0 }
 0x53f   : > { %928 = vmatmul.msk.f32.gmra.mxu0 %vm466_vm0, %v753_v1 }
 0x5b4   : > { %v780_v3 = vpop.f32.mrf.mxu0 }
 0x5b5   : > { %v781_v6 = vadd.f32 %v955_v2, %v780_v3 }
 0x5b7   : > { %v786_v7 = vadd.f32 %v781_v6, %v718_v50 }
 0x5b9   : > { %v788_v8 = vsel %vm466_vm0, %v786_v7, 0.0 }
 0x5ba   : > { %789 = vadd.xlane.f32.xlu2 %v788_v8 }
 0x5bc   : > { %v783_v9 = vpop.f32.mrf.mxu0 }
 0x5bd   : > { %v784_v10 = vadd.f32 %v955_v2, %v783_v9 }
 0x5bf   : > { %v787_v11 = vadd.f32 %v784_v10, %v719_v55 }
 0x5c1   : > { %v791_v12 = vsel %vm661_vm12, %v787_v11, 0.0 }
 0x5c2   : > { %792 = vadd.xlane.f32.xlu1 %v791_v12 }
 0x62d   : > { %v790_v13 = vpop.xlane.xlu2 %789 }
 0x62e   : > { %v794_v14 = vmul.f32 %v790_v13, %v1128_v5 }
 0x630   : > { %v796_v15 = vsub.f32 %v786_v7, %v794_v14 }
 0x632   : > { %v798_v16 = vmul.f32 %v796_v15, %v796_v15 }
 0x634   : > { %v800_v17 = vsel %vm466_vm0, %v798_v16, 0.0 }
 0x635   : > { %v793_v4 = vpop.xlane.xlu1 %792  ;;  %801 = vadd.xlane.f32.xlu2 %v800_v17 }
 0x636   : > { %v795_v18 = vmul.f32 %v793_v4, %v1128_v5 }
 0x638   : > { %v797_v19 = vsub.f32 %v787_v11, %v795_v18 }
 0x63a   : > { %v799_v20 = vmul.f32 %v797_v19, %v797_v19 }
 0x63c   : > { %v803_v21 = vsel %vm661_vm12, %v799_v20, 0.0 }
 0x63d   : > { %804 = vadd.xlane.f32.xlu2 %v803_v21 }
 0x6a8   : > { %v802_v22 = vpop.xlane.xlu2 %801 }
 0x6a9   : > { %v806_v23 = vmul.f32 %v802_v22, %v1128_v5 }
 0x6ab   : > { %v808_v24 = vadd.f32 1e-05, %v806_v23 }
 0x6ad   : > { %972 = vrsqrt.f32 %v808_v24  ;;  %vm816_vm6 = vweird.f32 %v808_v24 }
 0x6b0   : > { %v805_v25 = vpop.xlane.xlu2 %804 }
 0x6b1   : > { %v807_v26 = vmul.f32 %v805_v25, %v1128_v5  ;;  %v956_v5 = vld [vmem:[%s1211_s11] ss:$0 sm:$0xff] }
 0x6b3   : > { %v973_v27 = vpop.eup %972  ;;  %v809_v28 = vadd.f32 1e-05, %v807_v26 }
 0x6b4   : > { %v811_v29 = vmul.f32 %v973_v27, %v808_v24  ;;  %vm817_vm5 = vweird.f32 %v973_v27 }
 0x6b5   : > { %974 = vrsqrt.f32 %v809_v28  ;;  %vm818_vm7 = vmor %vm816_vm6, %vm817_vm5  ;;  %vm826_vm9 = vweird.f32 %v809_v28 }
 0x6b6   : > { %v812_v30 = vmul.f32 %v973_v27, %v811_v29  ;;  %976 = vrcp.f32 %v989_v38 }
 0x6b8   : > { %v813_v31 = vmul.f32 0.5, %v812_v30 }
 0x6ba   : > { %v814_v32 = vsub.f32 1.5, %v813_v31 }
 0x6bb   : > { %v975_v33 = vpop.eup %974 }
 0x6bc   : > { %v815_v34 = vmul.f32 %v973_v27, %v814_v32  ;;  %v821_v35 = vmul.f32 %v975_v33, %v809_v28  ;;  %vm827_vm8 = vweird.f32 %v975_v33  ;;  %v977_v45 = vpop.eup %976 }
 0x6bd   : > { %vm828_vm10 = vmor %vm826_vm9, %vm827_vm8  ;;  %v852_v49 = vmul.f32 9.0, %v977_v45  ;;  %vm856_vm11 = vweird.f32 %v977_v45 }
 0x6be   : > { %v819_v36 = vsel %vm818_vm7, %v973_v27, %v815_v34  ;;  %v822_v37 = vmul.f32 %v975_v33, %v821_v35 }
 0x6bf   : > { %v830_v40 = vmul.f32 %v819_v36, %v796_v15  ;;  %v853_v53 = vsub.f32 1.0, %v852_v49 }
 0x6c0   : > { %v823_v39 = vmul.f32 0.5, %v822_v37 }
 0x6c1   : > { %v835_v44 = vmul.f32 %v956_v5, %v830_v40  ;;  %v854_v57 = vmul.f32 %v977_v45, %v853_v53 }
 0x6c2   : > { %v824_v41 = vsub.f32 1.5, %v823_v39 }
 0x6c3   : > { %v840_v48 = vadd.f32 %v957_v43, %v835_v44  ;;  %v855_v60 = vadd.f32 %v977_v45, %v854_v57 }
 0x6c4   : > { %v825_v42 = vmul.f32 %v975_v33, %v824_v41 }
 0x6c5   : > { %v842_v52 = vsel %vm466_vm0, %v840_v48, 0.0  ;;  %v857_v63 = vsel %vm856_vm11, %v977_v45, %v855_v60 }
 0x6c6   : > { %v829_v46 = vsel %vm828_vm10, %v975_v33, %v825_v42 }
 0x6c7   : > { %v831_v47 = vmul.f32 %v829_v46, %v797_v19 }
 0x6c9   : > { %v836_v50 = vmul.f32 %v956_v5, %v831_v47 }
 0x6cb   : > { %v841_v51 = vadd.f32 %v957_v43, %v836_v50 }
 0x6cd   : > { %v843_v54 = vsel %vm661_vm12, %v841_v51, 0.0 }
 0x6ce   : > { %v844_v55 = vadd.f32 %v843_v54, %v842_v52 }
 0x6d0   : > { %v845_v56 = vrot.slane %v844_v55, 4 }
 0x6d2   : > { %v846_v58 = vadd.f32 %v845_v56, %v844_v55 }
 0x6d4   : > { %v847_v59 = vrot.slane %v846_v58, 2 }
 0x6d6   : > { %v848_v61 = vadd.f32 %v847_v59, %v846_v58 }
 0x6d8   : > { %v849_v62 = vrot.slane %v848_v61, 1 }
 0x6da   : > { %v850_v0 = vadd.f32 %v849_v62, %v848_v61 }
 0x6dc   : > { %v858_v1 = vmul.f32 %v857_v63, %v850_v0 }
 0x6de   : > { %859 = vst.msk [vmem:[%s436_s21] sm:$0x1] %vm661_vm12, %v858_v1 }
 0x6df PF: > { %s23_s25 = sadd.s32 1, %s984_s25  }
 0x6e0   : > { %p20_p4 = scmp.ge.s32.totalorder %s23_s25, 4  }
 0x6e2   :  { %22 = sbr.rel (!%p20_p4) target bundleno = 1 (0x1), region = 102 }

// kernel: aggregate_transformer_forward.7
= control target key start
LH: loop header
LB: loop body
LE: loop exit
PB: predicated region body
PF: predicated region fallthrough
CT: control target
= control target key end

     0   :  { %v98_v2 = vmov 0   ;;  %vm32_vm0 = vcmask 588800   ;;  %vm76_vm1 = vcmask 261120   ;;  %vm78_vm2 = vcmask 253952   ;;  %s172_s1 = inlined_call_operand.vmem [shape: f32[72,32], index: 1, kind: input, shape index: {}]   ;;  %s173_s3 = inlined_call_operand.vmem [shape: f32[9,1], index: 3, kind: input, shape index: {}]   ;;  %s174_s2 = inlined_call_operand.vmem [shape: f32[1,32], index: 2, kind: input, shape index: {}]   ;;  %s175_s0 = inlined_call_operand.vmem [shape: f32[9,72], index: 0, kind: input, shape index: {}]   ;;  %s176_s4 = inlined_call_operand.vmem [shape: f32[9,32], index: 4, kind: output, shape index: {}]  }
   0x1   :  { %v27_v0 = vld [vmem:[%s172_s1 + $0x40] sm:$0xff]  ;;  %v26_v1 = vld [vmem:[%s172_s1 + $0x38] sm:$0xff]  ;;  %96 = vset.pattern.permute.xlu0 %v98_v2  ;;  %v25_v3 = vld [vmem:[%s172_s1 + $0x30] sm:$0xff] }
   0x2   :  { %46 = vmatpush.msra.mxu0 %v27_v0  ;;  %86 = vmatpush.msra.mxu1 %v27_v0  ;;  %v62_v4 = vld [vmem:[%s173_s3] sm:$0xff]  ;;  %v24_v5 = vld [vmem:[%s172_s1 + $0x28] sm:$0xff]  ;;  %v22_v7 = vld [vmem:[%s172_s1 + $0x18] sm:$0xff] }
   0x3   :  { %66 = vperm.xlu0 %96, %v62_v4   ;;  %v23_v6 = vld [vmem:[%s172_s1 + $0x20] sm:$0xff]  ;;  %v63_v8 = vld [vmem:[%s173_s3 + $0x8] sm:$0x1]  ;;  %v21_v9 = vld [vmem:[%s172_s1 + $0x10] sm:$0xff] }
   0x4   :  { %47 = vmatpush.msra.mxu0 %v26_v1  ;;  %87 = vmatpush.msra.mxu1 %v26_v1  ;;  %v20_v10 = vld [vmem:[%s172_s1 + $0x8] sm:$0xff]  ;;  %v19_v11 = vld [vmem:[%s172_s1] sm:$0xff] }
   0x5   :  { %v17_v12 = vld [vmem:[%s175_s0] sm:$0xff]  ;;  %v18_v13 = vld [vmem:[%s175_s0 + $0x8] sm:$0x1] }
   0x6   :  { %48 = vmatpush.msra.mxu0 %v25_v3  ;;  %88 = vmatpush.msra.mxu1 %v25_v3  ;;  %v97_v15 = vld [vmem:[%s174_s2] ss:$0 sm:$0xff] }
   0x8   :  { %49 = vmatpush.msra.mxu0 %v24_v5  ;;  %89 = vmatpush.msra.mxu1 %v24_v5 }
   0xa   :  { %50 = vmatpush.msra.mxu0 %v23_v6  ;;  %90 = vmatpush.msra.mxu1 %v23_v6 }
   0xb   :  { %71 = vperm.xlu0 %96, %v63_v8  }
   0xc   :  { %51 = vmatpush.msra.mxu0 %v22_v7  ;;  %91 = vmatpush.msra.mxu1 %v22_v7 }
   0xe   :  { %52 = vmatpush.msra.mxu0 %v21_v9  ;;  %92 = vmatpush.msra.mxu1 %v21_v9 }
  0x10   :  { %53 = vmatpush.msra.mxu0 %v20_v10  ;;  %93 = vmatpush.msra.mxu1 %v20_v10 }
  0x12   :  { %54 = vmatpush.msra.mxu0 %v19_v11  ;;  %94 = vmatpush.msra.mxu1 %v19_v11 }
  0x13   :  { %84 = vmatmul.msk.f32.vlgmr.msra.gmra.mxu0 %vm32_vm0, %v17_v12  ;;  %85 = vmatmul.msk.f32.vlgmr.msra.gmra.mxu1 %vm32_vm0, %v18_v13 }
  0x75   :  { %v67_v14 = vpop.permute.xlu0 %66 }
  0x7d   :  { %v72_v20 = vpop.permute.xlu0 %71 }
  0x90   :  { %v56_v16 = vpop.f32.mrf.mxu0  ;;  %v59_v17 = vpop.f32.mrf.mxu1 }
  0x91   :  { %v57_v18 = vadd.f32 %v97_v15, %v56_v16  ;;  %v60_v19 = vadd.f32 %v97_v15, %v59_v17 }
  0x93   :  { %v74_v21 = vadd.f32 %v67_v14, %v57_v18  ;;  %v75_v22 = vadd.f32 %v72_v20, %v60_v19 }
  0x95   :  { %77 = vst.msk [vmem:[%s176_s4] sm:$0xff] %vm76_vm1, %v74_v21 }
  0x96   :  { %79 = vst.msk [vmem:[%s176_s4 + $0x8] sm:$0x1] %vm78_vm2, %v75_v22 }

// kernel: aggregate_transformer_forward.9
= control target key start
LH: loop header
LB: loop body
LE: loop exit
PB: predicated region body
PF: predicated region fallthrough
CT: control target
= control target key end

     0   :  { %vm88_vm0 = vcmask 261120   ;;  %vm141_vm1 = vcmask 9216   ;;  %vm172_vm6 = vcmask 1041408   ;;  %vm168_vm7 = vcmask 15360   ;;  %s618_s2 = inlined_call_operand.vmem [shape: f32[1,32,96], index: 2, kind: input, shape index: {}]   ;;  %s619_s0 = inlined_call_operand.vmem [shape: f32[2,32], index: 0, kind: input, shape index: {}]   ;;  %s620_s1 = inlined_call_operand.vmem [shape: f32[1,32], index: 1, kind: input, shape index: {}]   ;;  %s621_s3 = inlined_call_operand.vmem [shape: f32[1,1,96], index: 3, kind: input, shape index: {}]   ;;  %s622_s4 = inlined_call_operand.vmem [shape: f32[1,32,32], index: 4, kind: input, shape index: {}]   ;;  %s623_s5 = inlined_call_operand.vmem [shape: f32[1,1,32], index: 5, kind: input, shape index: {}]   ;;  %s624_s6 = inlined_call_operand.vmem [shape: f32[1,1,32], index: 6, kind: input, shape index: {}]   ;;  %s625_s7 = inlined_call_operand.vmem [shape: f32[1,1,32], index: 7, kind: input, shape index: {}]   ;;  %s626_s9 = inlined_call_operand.vmem [shape: f32[1,1,32], index: 9, kind: input, shape index: {}]   ;;  %s627_s8 = inlined_call_operand.vmem [shape: f32[1,32,32], index: 8, kind: input, shape index: {}]   ;;  %s628_s10 = inlined_call_operand.vmem [shape: f32[1,32,32], index: 10, kind: input, shape index: {}]   ;;  %s629_s11 = inlined_call_operand.vmem [shape: f32[1,1,32], index: 11, kind: input, shape index: {}]   ;;  %s630_s12 = inlined_call_operand.vmem [shape: f32[1,1,32], index: 12, kind: input, shape index: {}]   ;;  %s631_s13 = inlined_call_operand.vmem [shape: f32[1,1,32], index: 13, kind: input, shape index: {}]   ;;  %s632_s14 = inlined_call_operand.vmem [shape: f32[32,1], index: 14, kind: input, shape index: {}]   ;;  %s633_s15 = inlined_call_operand.<no memory space> [shape: f32[1,1], index: 15, kind: input, shape index: {}]   ;;  %s634_s16 = inlined_call_operand.vmem [shape: f32[2,1], index: 16, kind: output, shape index: {}]  }
   0x1   :  { %636 = sst [smem:[#allocation3_spill]] %s618_s2  ;;  %v55_v2 = vld [vmem:[%s619_s0] sm:$0x3]  ;;  %v69_v19 = vld [vmem:[%s622_s4 + $0x18] sm:$0xff]  ;;  %v68_v20 = vld [vmem:[%s622_s4 + $0x10] sm:$0xff]  ;;  %vm222_vm8 = vcmask 254976  }
   0x2   :  { %s637_s23 = sld [smem:[#allocation3_spill]]  ;;  %v393_v4 = vld [vmem:[%s620_s1] ss:$0 sm:$0xff]  ;;  %s413_s1 = smov 96   ;;  %213 = vmatpush.msra.mxu3 %v69_v19  ;;  %v67_v21 = vld [vmem:[%s622_s4 + $0x8] sm:$0xff]  ;;  %v415_v42 = vmov 32.0  }
   0x3   :  { %v519_v6 = vadd.f32 %v393_v4, %v55_v2  ;;  %v394_v7 = vld [vmem:[%s621_s3] ss:$0 sm:$0xff]  ;;  %s414_s3 = smov 64   ;;  %v76_v54 = vld [vmem:[%s627_s8 + $0x18] sm:$0xff]  ;;  %v75_v55 = vld [vmem:[%s627_s8 + $0x10] sm:$0xff] }
   0x4   :  { %214 = vmatpush.msra.mxu3 %v68_v20  ;;  %v66_v35 = vld [vmem:[%s622_s4] sm:$0xff]  ;;  %v74_v56 = vld [vmem:[%s627_s8 + $0x8] sm:$0xff]  ;;  %v81_v58 = vld [vmem:[%s628_s10 + $0x18] sm:$0xff] }
   0x5   :  { %v395_v37 = vld [vmem:[%s623_s5] ss:$0 sm:$0xff]  ;;  %v80_v59 = vld [vmem:[%s628_s10 + $0x10] sm:$0xff] }
   0x6   :  { %215 = vmatpush.msra.mxu3 %v67_v21  ;;  %v73_v57 = vld [vmem:[%s627_s8] sm:$0xff] }
   0x8   :  { %v64_v0 = vld [vmem:[%s637_s23 + $0x18] sm:$0xff]  ;;  %v63_v1 = vld [vmem:[%s637_s23 + $0x10] sm:$0xff]  ;;  %v62_v3 = vld [vmem:[%s637_s23 + $0x8] sm:$0xff]  ;;  %216 = vmatpush.msra.mxu3 %v66_v35 }
   0x9   :  { %104 = vmatpush.msra.mxu0 %v64_v0  ;;  %v61_v5 = vld [vmem:[%s637_s23] sm:$0xff] }
   0xb   :  { %105 = vmatpush.msra.mxu0 %v63_v1 }
   0xd   :  { %106 = vmatpush.msra.mxu0 %v62_v3 }
   0xf   :  { %107 = vmatpush.msra.mxu0 %v61_v5  ;;  %v396_v5 = vld [vmem:[%s624_s6] ss:$0 sm:$0xff] }
  0x10   :  { %381 = vmatmul.msk.f32.vlgmr.msra.gmra.mxu0 %vm88_vm0, %v519_v6 }
  0x8d   :  { %v109_v8 = vpop.f32.mrf.mxu0 }
  0x8e   :  { %v110_v9 = vadd.f32 %v394_v7, %v109_v8  ;;  %v397_v8 = vld [vmem:[%s625_s7] ss:$0 sm:$0xff] }
  0x90   :  { %114 = vrot.lane.b32.xlu0 %v110_v9, %s413_s1  ;;  %v112_v11 = vmul.f32 0.17677669, %v110_v9 }
 0x102   :  { %v115_v10 = vpop.permute.xlu0 %114 }
 0x103   :  { %382 = vmatpush.xpose.msk.msra.mxu1 %vm88_vm0, %v115_v10 }
 0x106   :  { %383 = vmatmul.msk.f32.vlgmr.msra.gmra.mxu1 %vm88_vm0, %v112_v11  ;;  %v79_v11 = vld [vmem:[%s628_s10 + $0x8] sm:$0xff] }
 0x107   :  { %305 = vmatpush.msrb.mxu1 %v81_v58 }
 0x109   :  { %306 = vmatpush.msrb.mxu1 %v80_v59 }
 0x10b   :  { %307 = vmatpush.msrb.mxu1 %v79_v11 }
 0x183   :  { %v138_v12 = vpop.f32.mrf.mxu1 }
 0x184   :  { %v142_v13 = vsel %vm141_vm1, %v138_v12, -inf }
 0x185   :  { %143 = vmax.xlane.f32.xlu0 %v142_v13  ;;  %v398_v13 = vld [vmem:[%s626_s9] ss:$0 sm:$0xff] }
 0x1f8   :  { %v144_v14 = vpop.xlane.xlu0 %143 }
 0x1f9   :  { %v145_v15 = vsub.f32 %v138_v12, %v144_v14  ;;  %v78_v12 = vld [vmem:[%s628_s10] sm:$0xff] }
 0x1fa   :  { %308 = vmatpush.msrb.mxu1 %v78_v12 }
 0x1fb   :  { %v146_v16 = vmul.f32 1.442695, %v145_v15 }
 0x1fd   :  { %403 = vpow2.f32 %v146_v16 }
 0x203   :  { %v404_v17 = vpop.eup %403 }
 0x204   :  { %v148_v18 = vsel %vm141_vm1, %v404_v17, 0.0  ;;  %vm375_vm1 = vcmask 1024  }
 0x205   :  { %149 = vadd.xlane.f32.xlu1 %v148_v18 }
 0x21e   :  { %166 = vrot.lane.b32.xlu1 %v110_v9, %s414_s3 }
 0x278   :  { %v150_v22 = vpop.xlane.xlu1 %149 }
 0x279   :  { %405 = vrcp.f32 %v150_v22  ;;  %v162_v28 = vand.u32 2147483648, %v150_v22  ;;  %vm156_vm3 = vweird.f32 %v150_v22  ;;  %v160_v29 = vand.u32 2147483647, %v150_v22 }
 0x27a   :  { %407 = vrcp.f32 %v415_v42 }
 0x27b   :  { %v163_v31 = vor.u32 1.1754944e-38, %v162_v28  ;;  %vm161_vm5 = vcmp.eq.f32.partialorder %v160_v29, 8.507059e+37  ;;  %v346_v28 = vld [vmem:[%s632_s14 + $0x10] sm:$0xff]  ;;  %v345_v29 = vld [vmem:[%s632_s14 + $0x8] sm:$0xff] }
 0x27f   :  { %v406_v23 = vpop.eup %405 }
 0x280   :  { %v152_v24 = vmul.f32 %v406_v23, %v150_v22  ;;  %vm157_vm2 = vweird.f32 %v406_v23  ;;  %v408_v43 = vpop.eup %407 }
 0x281   :  { %vm158_vm4 = vmor %vm156_vm3, %vm157_vm2  ;;  %v227_v44 = vmul.f32 32.0, %v408_v43  ;;  %vm231_vm9 = vweird.f32 %v408_v43 }
 0x282   :  { %v153_v25 = vsub.f32 1.0, %v152_v24 }
 0x283   :  { %v228_v45 = vsub.f32 1.0, %v227_v44  ;;  %v401_v44 = vld [vmem:[%s631_s13] ss:$0 sm:$0xff] }
 0x284   :  { %v154_v26 = vmul.f32 %v406_v23, %v153_v25 }
 0x285   :  { %v229_v46 = vmul.f32 %v408_v43, %v228_v45 }
 0x286   :  { %v155_v27 = vadd.f32 %v406_v23, %v154_v26 }
 0x287   :  { %v230_v47 = vadd.f32 %v408_v43, %v229_v46 }
 0x288   :  { %v159_v30 = vsel %vm158_vm4, %v406_v23, %v155_v27  ;;  %v347_v27 = vld [vmem:[%s632_s14 + $0x18] sm:$0xff] }
 0x289   :  { %v164_v32 = vsel %vm161_vm5, %v163_v31, %v159_v30  ;;  %v546_v48 = vsel %vm231_vm9, %v408_v43, %v230_v47  ;;  %367 = vmatpush.msrb.mxu0 %v347_v27  ;;  %v344_v30 = vld [vmem:[%s632_s14] sm:$0xff]  ;;  %v21_v31 = vstv %s633_s15 }
 0x28a   :  { %v165_v34 = vmul.f32 %v404_v17, %v164_v32  ;;  %v399_v17 = vld [vmem:[%s629_s11] ss:$0 sm:$0xff]  ;;  %22 = vst [vmem:[#allocation2] sm:$0x1] %v21_v31 }
 0x28b   :  { %368 = vmatpush.msrb.mxu0 %v346_v28 }
 0x28d   :  { %369 = vmatpush.msrb.mxu0 %v345_v29 }
 0x28f   :  { %370 = vmatpush.msrb.mxu0 %v344_v30 }
 0x290   :  { %v167_v33 = vpop.permute.xlu1 %166 }
 0x291   :  { %384 = vmatpush.msk.msra.mxu2 %vm172_vm6, %v167_v33  ;;  %v402_v47 = vld [vmem:[#allocation2] ss:$0 sm:$0xff] }
 0x292   :  { %385 = vmatmul.msk.f32.vlgmr.msra.gmra.mxu2 %vm168_vm7, %v165_v34 }
 0x293   :  { %278 = vmatpush.msrb.mxu2 %v76_v54 }
 0x295   :  { %279 = vmatpush.msrb.mxu2 %v75_v55 }
 0x297   :  { %280 = vmatpush.msrb.mxu2 %v74_v56 }
 0x299   :  { %281 = vmatpush.msrb.mxu2 %v73_v57 }
 0x315   :  { %v192_v36 = vpop.f32.mrf.mxu2 }
 0x316   :  { %386 = vmatmul.msk.f32.vlgmr.msra.gmra.mxu3 %vm88_vm0, %v192_v36 }
 0x399   :  { %v218_v38 = vpop.f32.mrf.mxu3 }
 0x39a   :  { %v219_v39 = vadd.f32 %v395_v37, %v218_v38 }
 0x39c   :  { %v221_v40 = vadd.f32 %v219_v39, %v519_v6 }
 0x39e   :  { %v223_v41 = vsel %vm222_vm8, %v221_v40, 0.0 }
 0x39f   :  { %224 = vadd.xlane.f32.xlu2 %v223_v41  ;;  %v400_v41 = vld [vmem:[%s630_s12] ss:$0 sm:$0xff] }
 0x412   :  { %v225_v49 = vpop.xlane.xlu2 %224 }
 0x413   :  { %v233_v50 = vmul.f32 %v546_v48, %v225_v49 }
 0x415   :  { %v234_v51 = vsub.f32 %v221_v40, %v233_v50 }
 0x417   :  { %v235_v52 = vmul.f32 %v234_v51, %v234_v51 }
 0x419   :  { %v236_v53 = vsel %vm222_vm8, %v235_v52, 0.0 }
 0x41a   :  { %237 = vadd.xlane.f32.xlu2 %v236_v53 }
 0x48d   :  { %v238_v60 = vpop.xlane.xlu2 %237 }
 0x48e   :  { %v239_v61 = vmul.f32 %v238_v60, %v546_v48 }
 0x490   :  { %v240_v62 = vadd.f32 1e-05, %v239_v61 }
 0x492   :  { %409 = vrsqrt.f32 %v240_v62  ;;  %vm247_vm11 = vweird.f32 %v240_v62 }
 0x498   :  { %v410_v63 = vpop.eup %409 }
 0x499   :  { %v242_v0 = vmul.f32 %v410_v63, %v240_v62  ;;  %vm248_vm10 = vweird.f32 %v410_v63 }
 0x49a   :  { %vm249_vm12 = vmor %vm247_vm11, %vm248_vm10 }
 0x49b   :  { %v243_v1 = vmul.f32 %v410_v63, %v242_v0 }
 0x49d   :  { %v244_v2 = vmul.f32 0.5, %v243_v1 }
 0x49f   :  { %v245_v3 = vsub.f32 1.5, %v244_v2 }
 0x4a1   :  { %v246_v4 = vmul.f32 %v410_v63, %v245_v3 }
 0x4a3   :  { %v250_v6 = vsel %vm249_vm12, %v410_v63, %v246_v4 }
 0x4a4   :  { %v251_v7 = vmul.f32 %v250_v6, %v234_v51 }
 0x4a6   :  { %v255_v9 = vmul.f32 %v396_v5, %v251_v7 }
 0x4a8   :  { %v259_v10 = vadd.f32 %v397_v8, %v255_v9 }
 0x4aa   :  { %387 = vmatmul.msk.f32.vlgmr.msrb.gmra.mxu2 %vm88_vm0, %v259_v10 }
 0x52d   :  { %v283_v14 = vpop.f32.mrf.mxu2 }
 0x52e   :  { %v284_v15 = vadd.f32 %v398_v13, %v283_v14 }
 0x530   :  { %v286_v16 = vmax.f32 %v284_v15, 0.0 }
 0x532   :  { %388 = vmatmul.msk.f32.vlgmr.msrb.gmra.mxu1 %vm88_vm0, %v286_v16 }
 0x5af   :  { %v310_v18 = vpop.f32.mrf.mxu1 }
 0x5b0   :  { %v311_v19 = vadd.f32 %v399_v17, %v310_v18 }
 0x5b2   :  { %v313_v20 = vadd.f32 %v311_v19, %v259_v10 }
 0x5b4   :  { %v314_v21 = vsel %vm222_vm8, %v313_v20, 0.0 }
 0x5b5   :  { %315 = vadd.xlane.f32.xlu2 %v314_v21 }
 0x628   :  { %v316_v22 = vpop.xlane.xlu2 %315 }
 0x629   :  { %v317_v23 = vmul.f32 %v316_v22, %v546_v48 }
 0x62b   :  { %v318_v24 = vsub.f32 %v313_v20, %v317_v23 }
 0x62d   :  { %v319_v25 = vmul.f32 %v318_v24, %v318_v24 }
 0x62f   :  { %v320_v26 = vsel %vm222_vm8, %v319_v25, 0.0 }
 0x630   :  { %321 = vadd.xlane.f32.xlu2 %v320_v26 }
 0x6a3   :  { %v322_v32 = vpop.xlane.xlu2 %321 }
 0x6a4   :  { %v323_v33 = vmul.f32 %v322_v32, %v546_v48 }
 0x6a6   :  { %v324_v34 = vadd.f32 1e-05, %v323_v33 }
 0x6a8   :  { %411 = vrsqrt.f32 %v324_v34  ;;  %vm331_vm14 = vweird.f32 %v324_v34 }
 0x6ae   :  { %v412_v35 = vpop.eup %411 }
 0x6af   :  { %v326_v36 = vmul.f32 %v412_v35, %v324_v34  ;;  %vm332_vm13 = vweird.f32 %v412_v35 }
 0x6b0   :  { %vm333_vm15 = vmor %vm331_vm14, %vm332_vm13 }
 0x6b1   :  { %v327_v37 = vmul.f32 %v412_v35, %v326_v36 }
 0x6b3   :  { %v328_v38 = vmul.f32 0.5, %v327_v37 }
 0x6b5   :  { %v329_v39 = vsub.f32 1.5, %v328_v38 }
 0x6b7   :  { %v330_v40 = vmul.f32 %v412_v35, %v329_v39 }
 0x6b9   :  { %v334_v42 = vsel %vm333_vm15, %v412_v35, %v330_v40 }
 0x6ba   :  { %v335_v43 = vmul.f32 %v334_v42, %v318_v24 }
 0x6bc   :  { %v339_v45 = vmul.f32 %v400_v41, %v335_v43 }
 0x6be   :  { %v343_v46 = vadd.f32 %v401_v44, %v339_v45 }
 0x6c0   :  { %389 = vmatmul.msk.f32.vlgmr.msrb.gmra.mxu0 %vm88_vm0, %v343_v46 }
 0x73d   :  { %v372_v48 = vpop.f32.mrf.mxu0 }
 0x73e   :  { %v373_v49 = vadd.f32 %v402_v47, %v372_v48 }
 0x740   :  { %376 = vst.msk [vmem:[%s634_s16] sm:$0x3] %vm375_vm1, %v373_v49 }

// kernel: aggregate_transformer_forward.8
= control target key start
LH: loop header
LB: loop body
LE: loop exit
PB: predicated region body
PF: predicated region fallthrough
CT: control target
= control target key end

     0   :  { %vm73_vm0 = vcmask 261120   ;;  %s524_s21 = smov 96   ;;  %vm205_vm1 = vcmask 1040384   ;;  %vm144_vm2 = vcmask 72704   ;;  %vm148_vm3 = vcmask 65536   ;;  %s726_s1 = inlined_call_operand.vmem [shape: f32[32,96], index: 1, kind: input, shape index: {}]   ;;  %s727_s2 = inlined_call_operand.vmem [shape: f32[1,96], index: 2, kind: input, shape index: {}]   ;;  %s728_s0 = inlined_call_operand.vmem [shape: f32[1,9,32], index: 0, kind: input, shape index: {}]   ;;  %s729_s3 = inlined_call_operand.vmem [shape: f32[32,32], index: 3, kind: input, shape index: {}]   ;;  %s730_s4 = inlined_call_operand.vmem [shape: f32[1,32], index: 4, kind: input, shape index: {}]   ;;  %s731_s5 = inlined_call_operand.vmem [shape: f32[1,32], index: 5, kind: input, shape index: {}]   ;;  %s732_s6 = inlined_call_operand.vmem [shape: f32[1,32], index: 6, kind: input, shape index: {}]   ;;  %s733_s8 = inlined_call_operand.vmem [shape: f32[1,32], index: 8, kind: input, shape index: {}]   ;;  %s734_s7 = inlined_call_operand.vmem [shape: f32[32,32], index: 7, kind: input, shape index: {}]   ;;  %s735_s9 = inlined_call_operand.vmem [shape: f32[32,32], index: 9, kind: input, shape index: {}]   ;;  %s736_s10 = inlined_call_operand.vmem [shape: f32[1,32], index: 10, kind: input, shape index: {}]   ;;  %s737_s11 = inlined_call_operand.vmem [shape: f32[1,32], index: 11, kind: input, shape index: {}]   ;;  %s738_s12 = inlined_call_operand.vmem [shape: f32[1,32], index: 12, kind: input, shape index: {}]   ;;  %s739_s13 = inlined_call_operand.vmem [shape: f32[1,1,32], index: 13, kind: output, shape index: {}]  }
   0x1   :  { %v49_v0 = vld [vmem:[%s726_s1 + $0x18] sm:$0xff]  ;;  %v48_v1 = vld [vmem:[%s726_s1 + $0x10] sm:$0xff]  ;;  %v47_v2 = vld [vmem:[%s726_s1 + $0x8] sm:$0xff]  ;;  %vm268_vm12 = vcmask 253952  }
   0x2   :  { %486 = vmatpush.msra.mxu1 %v49_v0  ;;  %92 = vmatpush.msra.mxu0 %v49_v0  ;;  %v46_v3 = vld [vmem:[%s726_s1] sm:$0xff]  ;;  %v613_v4 = vld [vmem:[%s728_s0 + $0x8] sm:$0x1]  ;;  %v54_v31 = vld [vmem:[%s729_s3 + $0x18] sm:$0xff] }
   0x3   :  { %v618_v5 = vld [vmem:[%s728_s0] sm:$0xff]  ;;  %s525_s0 = smov 64   ;;  %v53_v32 = vld [vmem:[%s729_s3 + $0x10] sm:$0xff]  ;;  %v52_v33 = vld [vmem:[%s729_s3 + $0x8] sm:$0xff] }
   0x4   :  { %487 = vmatpush.msra.mxu1 %v48_v1  ;;  %93 = vmatpush.msra.mxu0 %v48_v1  ;;  %v496_v6 = vld [vmem:[%s727_s2] ss:$0 sm:$0xff] }
   0x5   :  { %v51_v58 = vld [vmem:[%s729_s3] sm:$0xff] }
   0x6   :  { %488 = vmatpush.msra.mxu1 %v47_v2  ;;  %94 = vmatpush.msra.mxu0 %v47_v2  ;;  %v497_v61 = vld [vmem:[%s730_s4] ss:$0 sm:$0xff] }
   0x8   :  { %489 = vmatpush.msra.mxu1 %v46_v3  ;;  %95 = vmatpush.msra.mxu0 %v46_v3 }
   0x9   :  { %472 = vmatmul.msk.f32.vlgmr.msra.gmra.mxu1 %vm73_vm0, %v613_v4  ;;  %471 = vmatmul.msk.f32.vlgmr.msra.gmra.mxu0 %vm73_vm0, %v618_v5 }
  0x86   :  { %v100_v7 = vpop.f32.mrf.mxu1  ;;  %v97_v9 = vpop.f32.mrf.mxu0 }
  0x87   :  { %v101_v8 = vadd.f32 %v496_v6, %v100_v7  ;;  %v98_v10 = vadd.f32 %v496_v6, %v97_v9 }
  0x89   :  { %109 = vrot.lane.b32.xlu0 %v101_v8, %s524_s21  ;;  %v103_v13 = vmul.f32 0.17677669, %v98_v10  ;;  %v104_v15 = vmul.f32 0.17677669, %v101_v8 }
  0x91   :  { %107 = vrot.lane.b32.xlu0 %v98_v10, %s524_s21 }
  0x99   :  { %196 = vrot.lane.b32.xlu0 %v101_v8, %s525_s0  ;;  %v526_v8 = vmov 32.0  }
  0xfb   :  { %v110_v11 = vpop.permute.xlu0 %109 }
  0xfc   :  { %473 = vmatpush.xpose.msk.msrb.mxu1 %vm73_vm0, %v110_v11 }
 0x103   :  { %v108_v12 = vpop.permute.xlu0 %107 }
 0x104   :  { %474 = vmatpush.xpose.msk.msrb.mxu1 %vm73_vm0, %v108_v12 }
 0x107   :  { %475 = vmatmul.msk.f32.vlgmr.msrb.gmra.mxu1 %vm73_vm0, %v103_v13 }
 0x10b   :  { %v197_v14 = vpop.permute.xlu0 %196 }
 0x10c   :  { %477 = vmatpush.msk.msra.mxu2 %vm205_vm1, %v197_v14  ;;  %490 = vmatpush.msk.msra.mxu3 %vm205_vm1, %v197_v14 }
 0x10f   :  { %476 = vmatmul.msk.f32.gmra.mxu1 %vm73_vm0, %v104_v15 }
 0x184   :  { %v138_v16 = vpop.f32.mrf.mxu1 }
 0x185   :  { %v145_v17 = vsel %vm144_vm2, %v138_v16, -inf }
 0x186   :  { %146 = vmax.xlane.f32.xlu1 %v145_v17 }
 0x18c   :  { %v141_v18 = vpop.f32.mrf.mxu1 }
 0x18d   :  { %v149_v19 = vsel %vm148_vm3, %v141_v18, -inf }
 0x18e   :  { %150 = vmax.xlane.f32.xlu1 %v149_v19 }
 0x1a7   :  { %194 = vrot.lane.b32.xlu1 %v98_v10, %s525_s0 }
 0x1f9   :  { %v147_v20 = vpop.xlane.xlu1 %146 }
 0x1fa   :  { %v152_v21 = vsub.f32 %v138_v16, %v147_v20 }
 0x1fc   :  { %v154_v22 = vmul.f32 1.442695, %v152_v21 }
 0x1fe   :  { %504 = vpow2.f32 %v154_v22 }
 0x201   :  { %v151_v23 = vpop.xlane.xlu1 %150 }
 0x202   :  { %v153_v24 = vsub.f32 %v141_v18, %v151_v23  ;;  %v61_v23 = vld [vmem:[%s734_s7 + $0x18] sm:$0xff] }
 0x204   :  { %v505_v25 = vpop.eup %504  ;;  %v156_v26 = vmul.f32 1.442695, %v153_v24  ;;  %v60_v24 = vld [vmem:[%s734_s7 + $0x10] sm:$0xff] }
 0x205   :  { %v158_v27 = vsel %vm144_vm2, %v505_v25, 0.0 }
 0x206   :  { %506 = vpow2.f32 %v156_v26  ;;  %159 = vadd.xlane.f32.xlu2 %v158_v27  ;;  %v58_v26 = vld [vmem:[%s734_s7] sm:$0xff] }
 0x20c   :  { %v507_v28 = vpop.eup %506 }
 0x20d   :  { %v161_v29 = vsel %vm148_vm3, %v507_v28, 0.0 }
 0x20e   :  { %162 = vadd.xlane.f32.xlu2 %v161_v29 }
 0x219   :  { %v195_v30 = vpop.permute.xlu1 %194 }
 0x21a   :  { %223 = vmatpush.msra.mxu2 %v195_v30  ;;  %491 = vmatpush.msra.mxu3 %v195_v30  ;;  %v66_v30 = vld [vmem:[%s735_s9 + $0x18] sm:$0xff] }
 0x21b   :  { %382 = vmatpush.msrb.mxu0 %v66_v30 }
 0x21c   :  { %252 = vmatpush.msrb.mxu3 %v54_v31  ;;  %348 = vmatpush.msrb.mxu2 %v61_v23 }
 0x21e   :  { %253 = vmatpush.msrb.mxu3 %v53_v32  ;;  %349 = vmatpush.msrb.mxu2 %v60_v24 }
 0x220   :  { %254 = vmatpush.msrb.mxu3 %v52_v33 }
 0x222   :  { %255 = vmatpush.msrb.mxu3 %v51_v58  ;;  %v63_v58 = vld [vmem:[%s735_s9] sm:$0xff] }
 0x279   :  { %v160_v34 = vpop.xlane.xlu2 %159 }
 0x27a   :  { %508 = vrcp.f32 %v160_v34  ;;  %v175_v39 = vand.u32 2147483648, %v160_v34  ;;  %v173_v41 = vand.u32 2147483647, %v160_v34  ;;  %vm169_vm5 = vweird.f32 %v160_v34 }
 0x27c   :  { %v176_v44 = vor.u32 1.1754944e-38, %v175_v39  ;;  %vm174_vm7 = vcmp.eq.f32.partialorder %v173_v41, 8.507059e+37 }
 0x280   :  { %v509_v35 = vpop.eup %508 }
 0x281   :  { %v165_v36 = vmul.f32 %v509_v35, %v160_v34  ;;  %v163_v37 = vpop.xlane.xlu2 %162  ;;  %vm170_vm4 = vweird.f32 %v509_v35 }
 0x282   :  { %510 = vrcp.f32 %v163_v37  ;;  %vm171_vm6 = vmor %vm169_vm5, %vm170_vm4  ;;  %v190_v50 = vand.u32 2147483648, %v163_v37  ;;  %v188_v52 = vand.u32 2147483647, %v163_v37  ;;  %vm184_vm9 = vweird.f32 %v163_v37 }
 0x283   :  { %v166_v38 = vsub.f32 1.0, %v165_v36  ;;  %512 = vrcp.f32 %v526_v8 }
 0x284   :  { %v191_v54 = vor.u32 1.1754944e-38, %v190_v50  ;;  %vm189_vm11 = vcmp.eq.f32.partialorder %v188_v52, 8.507059e+37 }
 0x285   :  { %v167_v40 = vmul.f32 %v509_v35, %v166_v38 }
 0x287   :  { %v168_v42 = vadd.f32 %v509_v35, %v167_v40 }
 0x288   :  { %v511_v43 = vpop.eup %510 }
 0x289   :  { %v180_v45 = vmul.f32 %v511_v43, %v163_v37  ;;  %v172_v46 = vsel %vm171_vm6, %v509_v35, %v168_v42  ;;  %vm185_vm8 = vweird.f32 %v511_v43  ;;  %v513_v9 = vpop.eup %512  ;;  %v498_v42 = vld [vmem:[%s731_s5] ss:$0 sm:$0xff] }
 0x28a   :  { %v177_v47 = vsel %vm174_vm7, %v176_v44, %v172_v46  ;;  %vm186_vm10 = vmor %vm184_vm9, %vm185_vm8  ;;  %v273_v10 = vmul.f32 32.0, %v513_v9  ;;  %vm277_vm13 = vweird.f32 %v513_v9  ;;  %v499_v46 = vld [vmem:[%s732_s6] ss:$0 sm:$0xff] }
 0x28b   :  { %v181_v48 = vsub.f32 1.0, %v180_v45  ;;  %v178_v49 = vmul.f32 %v505_v25, %v177_v47  ;;  %v59_v25 = vld [vmem:[%s734_s7 + $0x8] sm:$0xff] }
 0x28c   :  { %v274_v11 = vsub.f32 1.0, %v273_v10  ;;  %350 = vmatpush.msrb.mxu2 %v59_v25 }
 0x28d   :  { %v182_v51 = vmul.f32 %v511_v43, %v181_v48  ;;  %478 = vmatmul.msk.f32.vlgmr.msra.gmra.mxu2 %vm144_vm2, %v178_v49 }
 0x28e   :  { %v275_v12 = vmul.f32 %v513_v9, %v274_v11  ;;  %351 = vmatpush.msrb.mxu2 %v58_v26 }
 0x28f   :  { %v183_v53 = vadd.f32 %v511_v43, %v182_v51 }
 0x290   :  { %v276_v13 = vadd.f32 %v513_v9, %v275_v12 }
 0x291   :  { %v187_v55 = vsel %vm186_vm10, %v511_v43, %v183_v53 }
 0x292   :  { %v192_v56 = vsel %vm189_vm11, %v191_v54, %v187_v55 }
 0x293   :  { %v193_v57 = vmul.f32 %v507_v28, %v192_v56  ;;  %v65_v56 = vld [vmem:[%s735_s9 + $0x10] sm:$0xff] }
 0x294   :  { %383 = vmatpush.msrb.mxu0 %v65_v56 }
 0x295   :  { %479 = vmatmul.msk.f32.vlgmr.msra.gmra.mxu3 %vm144_vm2, %v193_v57  ;;  %v64_v57 = vld [vmem:[%s735_s9 + $0x8] sm:$0xff] }
 0x296   :  { %384 = vmatpush.msrb.mxu0 %v64_v57 }
 0x298   :  { %385 = vmatpush.msrb.mxu0 %v63_v58 }
 0x310   :  { %v225_v59 = vpop.f32.mrf.mxu2 }
 0x311   :  { %480 = vmatmul.msk.f32.vlgmr.msrb.gmra.mxu3 %vm73_vm0, %v225_v59  ;;  %v500_v59 = vld [vmem:[%s733_s8] ss:$0 sm:$0xff] }
 0x318   :  { %v228_v60 = vpop.f32.mrf.mxu3 }
 0x319   :  { %481 = vmatmul.msk.f32.gmra.mxu3 %vm73_vm0, %v228_v60 }
 0x394   :  { %v257_v62 = vpop.f32.mrf.mxu3 }
 0x395   :  { %v258_v63 = vadd.f32 %v497_v61, %v257_v62 }
 0x397   :  { %v263_v0 = vadd.f32 %v258_v63, %v618_v5  ;;  %v658_v5 = vsel %vm277_vm13, %v513_v9, %v276_v13 }
 0x399   :  { %v265_v1 = vsel %vm73_vm0, %v263_v0, 0.0 }
 0x39a   :  { %266 = vadd.xlane.f32.xlu2 %v265_v1 }
 0x39c   :  { %v260_v2 = vpop.f32.mrf.mxu3 }
 0x39d   :  { %v261_v3 = vadd.f32 %v497_v61, %v260_v2  ;;  %v501_v2 = vld [vmem:[%s736_s10] ss:$0 sm:$0xff] }
 0x39f   :  { %v264_v6 = vadd.f32 %v261_v3, %v613_v4 }
 0x3a1   :  { %v269_v7 = vsel %vm268_vm12, %v264_v6, 0.0 }
 0x3a2   :  { %270 = vadd.xlane.f32.xlu0 %v269_v7 }
 0x40d   :  { %v267_v14 = vpop.xlane.xlu2 %266 }
 0x40e   :  { %v279_v15 = vmul.f32 %v658_v5, %v267_v14 }
 0x410   :  { %v281_v16 = vsub.f32 %v263_v0, %v279_v15 }
 0x412   :  { %v283_v17 = vmul.f32 %v281_v16, %v281_v16 }
 0x414   :  { %v285_v4 = vsel %vm73_vm0, %v283_v17, 0.0 }
 0x415   :  { %v271_v18 = vpop.xlane.xlu0 %270  ;;  %286 = vadd.xlane.f32.xlu2 %v285_v4 }
 0x416   :  { %v280_v19 = vmul.f32 %v658_v5, %v271_v18 }
 0x418   :  { %v282_v20 = vsub.f32 %v264_v6, %v280_v19 }
 0x41a   :  { %v284_v21 = vmul.f32 %v282_v20, %v282_v20 }
 0x41c   :  { %v288_v22 = vsel %vm268_vm12, %v284_v21, 0.0 }
 0x41d   :  { %289 = vadd.xlane.f32.xlu2 %v288_v22 }
 0x488   :  { %v287_v27 = vpop.xlane.xlu2 %286 }
 0x489   :  { %v291_v28 = vmul.f32 %v287_v27, %v658_v5 }
 0x48b   :  { %v293_v29 = vadd.f32 1e-05, %v291_v28 }
 0x48d   :  { %514 = vrsqrt.f32 %v293_v29  ;;  %vm301_vm15 = vweird.f32 %v293_v29 }
 0x490   :  { %v290_v31 = vpop.xlane.xlu2 %289 }
 0x491   :  { %v292_v32 = vmul.f32 %v290_v31, %v658_v5 }
 0x493   :  { %v515_v33 = vpop.eup %514  ;;  %v294_v34 = vadd.f32 1e-05, %v292_v32 }
 0x494   :  { %v296_v35 = vmul.f32 %v515_v33, %v293_v29  ;;  %vm302_vm14 = vweird.f32 %v515_v33 }
 0x495   :  { %516 = vrsqrt.f32 %v294_v34  ;;  %vm303_vm1 = vmor %vm301_vm15, %vm302_vm14  ;;  %vm311_vm3 = vweird.f32 %v294_v34 }
 0x496   :  { %v297_v36 = vmul.f32 %v515_v33, %v296_v35 }
 0x498   :  { %v298_v37 = vmul.f32 0.5, %v297_v36 }
 0x49a   :  { %v299_v38 = vsub.f32 1.5, %v298_v37 }
 0x49b   :  { %v517_v39 = vpop.eup %516 }
 0x49c   :  { %v300_v40 = vmul.f32 %v515_v33, %v299_v38  ;;  %v306_v41 = vmul.f32 %v517_v39, %v294_v34  ;;  %vm312_vm2 = vweird.f32 %v517_v39  ;;  %v527_v38 = vmov 9.0  }
 0x49d   :  { %vm313_vm4 = vmor %vm311_vm3, %vm312_vm2 }
 0x49e   :  { %v304_v43 = vsel %vm303_vm1, %v515_v33, %v300_v40  ;;  %v307_v44 = vmul.f32 %v517_v39, %v306_v41 }
 0x49f   :  { %v315_v45 = vmul.f32 %v304_v43, %v281_v16  ;;  %v503_v43 = vld [vmem:[%s738_s12] ss:$0 sm:$0xff] }
 0x4a0   :  { %v308_v47 = vmul.f32 0.5, %v307_v44 }
 0x4a1   :  { %v320_v48 = vmul.f32 %v498_v42, %v315_v45 }
 0x4a2   :  { %v309_v49 = vsub.f32 1.5, %v308_v47 }
 0x4a3   :  { %v325_v50 = vadd.f32 %v499_v46, %v320_v48 }
 0x4a4   :  { %v310_v51 = vmul.f32 %v517_v39, %v309_v49 }
 0x4a5   :  { %482 = vmatmul.msk.f32.vlgmr.msrb.gmra.mxu2 %vm73_vm0, %v325_v50 }
 0x4a6   :  { %v314_v52 = vsel %vm313_vm4, %v517_v39, %v310_v51 }
 0x4a7   :  { %v316_v53 = vmul.f32 %v314_v52, %v282_v20 }
 0x4a9   :  { %v321_v54 = vmul.f32 %v498_v42, %v316_v53 }
 0x4ab   :  { %v326_v55 = vadd.f32 %v499_v46, %v321_v54 }
 0x4ad   :  { %483 = vmatmul.msk.f32.gmra.mxu2 %vm73_vm0, %v326_v55 }
 0x528   :  { %v353_v60 = vpop.f32.mrf.mxu2 }
 0x529   :  { %v354_v61 = vadd.f32 %v500_v59, %v353_v60 }
 0x52b   :  { %v359_v62 = vmax.f32 %v354_v61, 0.0 }
 0x52d   :  { %484 = vmatmul.msk.f32.vlgmr.msrb.gmra.mxu0 %vm73_vm0, %v359_v62 }
 0x530   :  { %v356_v63 = vpop.f32.mrf.mxu2 }
 0x531   :  { %v357_v0 = vadd.f32 %v500_v59, %v356_v63 }
 0x533   :  { %v360_v1 = vmax.f32 %v357_v0, 0.0 }
 0x535   :  { %485 = vmatmul.msk.f32.gmra.mxu0 %vm73_vm0, %v360_v1 }
 0x5aa   :  { %v387_v3 = vpop.f32.mrf.mxu0 }
 0x5ab   :  { %v388_v6 = vadd.f32 %v501_v2, %v387_v3 }
 0x5ad   :  { %v393_v7 = vadd.f32 %v388_v6, %v325_v50 }
 0x5af   :  { %v395_v8 = vsel %vm73_vm0, %v393_v7, 0.0 }
 0x5b0   :  { %396 = vadd.xlane.f32.xlu2 %v395_v8 }
 0x5b2   :  { %v390_v9 = vpop.f32.mrf.mxu0 }
 0x5b3   :  { %v391_v10 = vadd.f32 %v501_v2, %v390_v9 }
 0x5b5   :  { %v394_v11 = vadd.f32 %v391_v10, %v326_v55 }
 0x5b7   :  { %v398_v12 = vsel %vm268_vm12, %v394_v11, 0.0 }
 0x5b8   :  { %399 = vadd.xlane.f32.xlu1 %v398_v12 }
 0x623   :  { %v397_v13 = vpop.xlane.xlu2 %396 }
 0x624   :  { %v401_v14 = vmul.f32 %v397_v13, %v658_v5 }
 0x626   :  { %v403_v15 = vsub.f32 %v393_v7, %v401_v14 }
 0x628   :  { %v405_v16 = vmul.f32 %v403_v15, %v403_v15 }
 0x62a   :  { %v407_v17 = vsel %vm73_vm0, %v405_v16, 0.0 }
 0x62b   :  { %v400_v4 = vpop.xlane.xlu1 %399  ;;  %408 = vadd.xlane.f32.xlu2 %v407_v17 }
 0x62c   :  { %v402_v18 = vmul.f32 %v400_v4, %v658_v5 }
 0x62e   :  { %v404_v19 = vsub.f32 %v394_v11, %v402_v18 }
 0x630   :  { %v406_v20 = vmul.f32 %v404_v19, %v404_v19 }
 0x632   :  { %v410_v21 = vsel %vm268_vm12, %v406_v20, 0.0 }
 0x633   :  { %411 = vadd.xlane.f32.xlu2 %v410_v21 }
 0x69e   :  { %v409_v22 = vpop.xlane.xlu2 %408 }
 0x69f   :  { %v413_v23 = vmul.f32 %v409_v22, %v658_v5 }
 0x6a1   :  { %v415_v24 = vadd.f32 1e-05, %v413_v23 }
 0x6a3   :  { %518 = vrsqrt.f32 %v415_v24  ;;  %vm423_vm6 = vweird.f32 %v415_v24 }
 0x6a6   :  { %v412_v25 = vpop.xlane.xlu2 %411 }
 0x6a7   :  { %v414_v26 = vmul.f32 %v412_v25, %v658_v5  ;;  %v502_v5 = vld [vmem:[%s737_s11] ss:$0 sm:$0xff] }
 0x6a9   :  { %v519_v27 = vpop.eup %518  ;;  %v416_v28 = vadd.f32 1e-05, %v414_v26 }
 0x6aa   :  { %v418_v29 = vmul.f32 %v519_v27, %v415_v24  ;;  %vm424_vm5 = vweird.f32 %v519_v27 }
 0x6ab   :  { %520 = vrsqrt.f32 %v416_v28  ;;  %vm425_vm7 = vmor %vm423_vm6, %vm424_vm5  ;;  %vm433_vm9 = vweird.f32 %v416_v28 }
 0x6ac   :  { %v419_v30 = vmul.f32 %v519_v27, %v418_v29  ;;  %522 = vrcp.f32 %v527_v38 }
 0x6ae   :  { %v420_v31 = vmul.f32 0.5, %v419_v30 }
 0x6b0   :  { %v421_v32 = vsub.f32 1.5, %v420_v31 }
 0x6b1   :  { %v521_v33 = vpop.eup %520 }
 0x6b2   :  { %v422_v34 = vmul.f32 %v519_v27, %v421_v32  ;;  %v428_v35 = vmul.f32 %v521_v33, %v416_v28  ;;  %vm434_vm8 = vweird.f32 %v521_v33  ;;  %v523_v45 = vpop.eup %522 }
 0x6b3   :  { %vm435_vm10 = vmor %vm433_vm9, %vm434_vm8  ;;  %v459_v49 = vmul.f32 9.0, %v523_v45  ;;  %vm463_vm11 = vweird.f32 %v523_v45 }
 0x6b4   :  { %v426_v36 = vsel %vm425_vm7, %v519_v27, %v422_v34  ;;  %v429_v37 = vmul.f32 %v521_v33, %v428_v35 }
 0x6b5   :  { %v437_v40 = vmul.f32 %v426_v36, %v403_v15  ;;  %v460_v53 = vsub.f32 1.0, %v459_v49 }
 0x6b6   :  { %v430_v39 = vmul.f32 0.5, %v429_v37 }
 0x6b7   :  { %v442_v44 = vmul.f32 %v502_v5, %v437_v40  ;;  %v461_v57 = vmul.f32 %v523_v45, %v460_v53 }
 0x6b8   :  { %v431_v41 = vsub.f32 1.5, %v430_v39 }
 0x6b9   :  { %v447_v48 = vadd.f32 %v503_v43, %v442_v44  ;;  %v462_v60 = vadd.f32 %v523_v45, %v461_v57 }
 0x6ba   :  { %v432_v42 = vmul.f32 %v521_v33, %v431_v41 }
 0x6bb   :  { %v449_v52 = vsel %vm73_vm0, %v447_v48, 0.0  ;;  %v464_v63 = vsel %vm463_vm11, %v523_v45, %v462_v60 }
 0x6bc   :  { %v436_v46 = vsel %vm435_vm10, %v521_v33, %v432_v42 }
 0x6bd   :  { %v438_v47 = vmul.f32 %v436_v46, %v404_v19 }
 0x6bf   :  { %v443_v50 = vmul.f32 %v502_v5, %v438_v47 }
 0x6c1   :  { %v448_v51 = vadd.f32 %v503_v43, %v443_v50 }
 0x6c3   :  { %v450_v54 = vsel %vm268_vm12, %v448_v51, 0.0 }
 0x6c4   :  { %v451_v55 = vadd.f32 %v450_v54, %v449_v52 }
 0x6c6   :  { %v452_v56 = vrot.slane %v451_v55, 4 }
 0x6c8   :  { %v453_v58 = vadd.f32 %v452_v56, %v451_v55 }
 0x6ca   :  { %v454_v59 = vrot.slane %v453_v58, 2 }
 0x6cc   :  { %v455_v61 = vadd.f32 %v454_v59, %v453_v58 }
 0x6ce   :  { %v456_v62 = vrot.slane %v455_v61, 1 }
 0x6d0   :  { %v457_v0 = vadd.f32 %v456_v62, %v455_v61 }
 0x6d2   :  { %v465_v1 = vmul.f32 %v464_v63, %v457_v0 }
 0x6d4   :  { %466 = vst.msk [vmem:[%s739_s13] sm:$0x1] %vm268_vm12, %v465_v1 }

</bundles_post_ra>
